<compile_context>
chip_gen: v7x
topology: tpu7x:2x2x1
jax: 0.10.0
libtpu: 0.0.40
codegen_flags: <defaults>
</compile_context>

<pallas_src>
import functools
import math

import jax
import jax.numpy as jnp
import numpy as np
from jax import lax
from jax.experimental import pallas as pl
from jax.experimental.pallas import tpu as pltpu


def _encoder_kernel(x_ref,
                    wq_ref, bq_ref, wk_ref, bk_ref, wv_ref, bv_ref,
                    w1_ref, b1_ref, w2_ref, b2_ref, g_ref, bt_ref,
                    out_ref, key_ref, *, n_heads):
    x3 = x_ref[...]                          # (Bb, F, E) f32
    Bb, F, E = x3.shape
    M = Bb * F
    emb = E // n_heads

    def cshift(a, s):
        # circular shift along the sequence axis F (axis=1), per batch element.
        # s=+1: row t holds a[t-1];  s=-1: row t holds a[t+1].
        if s == 1:
            return jnp.concatenate([a[:, F - 1:, :], a[:, :F - 1, :]], axis=1)
        return jnp.concatenate([a[:, 1:, :], a[:, :1, :]], axis=1)

    def cconv(a3, w_ref, b_ref):
        # Conv1d(kernel=3, padding=1, padding_mode='circular') over F, with the
        # 3 taps fused into a single (M, 3*Cin) @ (3*Cin, Cout) MXU matmul.
        xcat = jnp.concatenate([cshift(a3, 1), a3, cshift(a3, -1)], axis=-1)
        xcat = xcat.reshape(M, 3 * a3.shape[-1]).astype(jnp.bfloat16)
        y = lax.dot_general(xcat, w_ref[...], (((1,), (0,)), ((), ())),
                            preferred_element_type=jnp.float32)
        return (y + b_ref[...]).reshape(Bb, F, -1)

    q3 = cconv(x3, wq_ref, bq_ref)           # (Bb, F, E) f32
    k3 = cconv(x3, wk_ref, bk_ref)
    v3 = cconv(x3, wv_ref, bv_ref)

    # lane-dense key output; the (B, H, F, emb) view is built in the wrapper.
    key_ref[...] = k3.astype(key_ref.dtype)

    scale = 1.0 / math.sqrt(n_heads)         # matches PyTorch: / sqrt(n_heads)
    ctx_parts = []
    for h in range(n_heads):                 # H is small & static -> unrolled
        sl = slice(h * emb, (h + 1) * emb)
        qh = (q3[:, :, sl] * scale).astype(jnp.bfloat16)   # scale hoisted onto q
        kh = k3[:, :, sl].astype(jnp.bfloat16)
        vh = v3[:, :, sl].astype(jnp.bfloat16)
        scores = jnp.einsum('bqe,bke->bqk', qh, kh,
                            preferred_element_type=jnp.float32)
        m = jnp.max(scores, axis=-1, keepdims=True)
        e = jnp.exp(scores - m)
        inv = pl.reciprocal(jnp.sum(e, axis=-1, keepdims=True), approx=True)
        probs = (e * inv).astype(jnp.bfloat16)
        ctx_parts.append(jnp.einsum('bqk,bke->bqe', probs, vh,
                                    preferred_element_type=jnp.float32))
    ctx = jnp.concatenate(ctx_parts, axis=-1)              # (Bb, F, E) f32

    # Convlayer (fd_num=0): conv(E->d_ff) -> ReLU -> conv(d_ff->E) -> LayerNorm
    h1 = jnp.maximum(cconv(ctx, w1_ref, b1_ref), 0.0)
    h2 = cconv(h1, w2_ref, b2_ref).reshape(M, E)
    mu = jnp.mean(h2, axis=-1, keepdims=True)
    var = jnp.mean((h2 - mu) ** 2, axis=-1, keepdims=True)
    ln = (h2 - mu) * lax.rsqrt(var + 1e-5) * g_ref[...] + bt_ref[...]

    out_ref[...] = (ln.reshape(Bb, F, E) + x3).astype(out_ref.dtype)   # residual


def _pick_block_batch(B, F, target_rows=256):
    # Largest divisor of B such that the packed matmul M dimension (Bb*F) stays
    # within one MXU pass worth of rows; fills the MXU and amortizes per-step
    # overhead while keeping the batch grid axis available for megacore (v7x).
    bb = 1
    for cand in range(1, B + 1):
        if B % cand == 0 and cand * F <= target_rows:
            bb = cand
    return bb


def encoder_layer(x, params, n_heads):
    B, F, E = x.shape
    Dff = params['w1_cat'].shape[1]
    emb = E // n_heads
    Bb = _pick_block_batch(B, F)
    grid = (B // Bb,)

    def const_spec(shape):
        n = len(shape)
        return pl.BlockSpec(shape, lambda b, _n=n: (0,) * _n)

    in_specs = [
        pl.BlockSpec((Bb, F, E), lambda b: (b, 0, 0)),     # x
        const_spec((3 * E, E)), const_spec((1, E)),        # Query conv (fused taps)
        const_spec((3 * E, E)), const_spec((1, E)),        # Key conv
        const_spec((3 * E, E)), const_spec((1, E)),        # Value conv
        const_spec((3 * E, Dff)), const_spec((1, Dff)),    # Convlayer conv1
        const_spec((3 * Dff, E)), const_spec((1, E)),      # Convlayer conv2
        const_spec((1, E)), const_spec((1, E)),            # LayerNorm gamma, beta
    ]
    out_specs = [
        pl.BlockSpec((Bb, F, E), lambda b: (b, 0, 0)),     # encoder output
        pl.BlockSpec((Bb, F, E), lambda b: (b, 0, 0)),     # key (lane-dense)
    ]
    out_shape = [
        jax.ShapeDtypeStruct((B, F, E), jnp.float32),
        jax.ShapeDtypeStruct((B, F, E), jnp.float32),
    ]

    kernel = functools.partial(_encoder_kernel, n_heads=n_heads)
    out, key_dense = pl.pallas_call(
        kernel,
        out_shape=out_shape,
        grid=grid,
        in_specs=in_specs,
        out_specs=out_specs,
        compiler_params=pltpu.CompilerParams(
            dimension_semantics=("parallel",)),
    )(x,
      params['wq_cat'], params['bq'][None, :],
      params['wk_cat'], params['bk'][None, :],
      params['wv_cat'], params['bv'][None, :],
      params['w1_cat'], params['b1'][None, :],
      params['w2_cat'], params['b2'][None, :],
      params['gamma'][None, :], params['beta'][None, :])

    # (B, F, E) -> (B, H, F, emb), exactly the PyTorch reshape/permute.
    key_layer = key_dense.reshape(B, F, n_heads, emb).transpose(0, 2, 1, 3)
    return out, key_layer


def init_params(key, d_model, d_ff):
    ks = jax.random.split(key, 10)

    def conv_w(k, cout, cin):
        bound = 1.0 / math.sqrt(cin * 3)
        return jax.random.uniform(k, (cout, cin, 3), jnp.float32, -bound, bound)

    def conv_b(k, cout, cin):
        bound = 1.0 / math.sqrt(cin * 3)
        return jax.random.uniform(k, (cout,), jnp.float32, -bound, bound)

    p = {}
    p['wq'] = conv_w(ks[0], d_model, d_model); p['bq'] = conv_b(ks[1], d_model, d_model)
    p['wk'] = conv_w(ks[2], d_model, d_model); p['bk'] = conv_b(ks[3], d_model, d_model)
    p['wv'] = conv_w(ks[4], d_model, d_model); p['bv'] = conv_b(ks[5], d_model, d_model)
    p['w1'] = conv_w(ks[6], d_ff, d_model);    p['b1'] = conv_b(ks[7], d_ff, d_model)
    p['w2'] = conv_w(ks[8], d_model, d_ff);    p['b2'] = conv_b(ks[9], d_model, d_ff)
    p['gamma'] = jnp.ones((d_model,), jnp.float32)
    p['beta'] = jnp.zeros((d_model,), jnp.float32)
    # fused-tap kernel layout: PyTorch (Cout, Cin, 3) -> (3*Cin, Cout) bf16,
    # row blocks ordered [tap for x[t-1], tap for x[t], tap for x[t+1]].
    for name in ('wq', 'wk', 'wv', 'w1', 'w2'):
        w = p[name]
        p[name + '_cat'] = (jnp.transpose(w, (2, 1, 0))
                            .reshape(-1, w.shape[0]).astype(jnp.bfloat16))
    return p


def ref_forward(x, p, n_heads):
    """Pure-JAX f32 reference matching the PyTorch forward semantics."""
    B, F, E = x.shape
    emb = E // n_heads

    def cconv(inp, w, b):  # inp (B,F,Cin), w (Cout,Cin,3), b (Cout,)
        xm = jnp.roll(inp, 1, axis=1)    # x[t-1]
        xp = jnp.roll(inp, -1, axis=1)   # x[t+1]
        return xm @ w[:, :, 0].T + inp @ w[:, :, 1].T + xp @ w[:, :, 2].T + b

    q = cconv(x, p['wq'], p['bq'])
    k = cconv(x, p['wk'], p['bk'])
    v = cconv(x, p['wv'], p['bv'])
    qh = q.reshape(B, F, n_heads, emb).transpose(0, 2, 1, 3)
    kh = k.reshape(B, F, n_heads, emb).transpose(0, 2, 1, 3)
    vh = v.reshape(B, F, n_heads, emb).transpose(0, 2, 1, 3)
    scores = jnp.einsum('bhqe,bhke->bhqk', qh, kh) / math.sqrt(n_heads)
    probs = jax.nn.softmax(scores, axis=-1)
    ctx = jnp.einsum('bhqk,bhke->bhqe', probs, vh)
    ctx = ctx.transpose(0, 2, 1, 3).reshape(B, F, E)
    h1 = jax.nn.relu(cconv(ctx, p['w1'], p['b1']))
    h2 = cconv(h1, p['w2'], p['b2'])
    mu = h2.mean(-1, keepdims=True)
    var = ((h2 - mu) ** 2).mean(-1, keepdims=True)
    ln = (h2 - mu) / jnp.sqrt(var + 1e-5) * p['gamma'] + p['beta']
    return ln + x, kh


if __name__ == "__main__":
    # small shapes consistent with the module: d_model=32, n_heads=4, fea_num=8
    B, F, E, H, DFF = 2, 8, 32, 4, 64
    key = jax.random.PRNGKey(0)
    kx, kp = jax.random.split(key)
    x = jax.random.normal(kx, (B, F, E), jnp.float32)
    params = init_params(kp, E, DFF)

    out, key_layer = encoder_layer(x, params, H)
    out = jax.block_until_ready(out)
    key_layer = jax.block_until_ready(key_layer)

    out_ref, key_ref_ = ref_forward(x, params, H)
    np.testing.assert_allclose(np.asarray(out), np.asarray(out_ref),
                               rtol=5e-2, atol=5e-2)
    np.testing.assert_allclose(np.asarray(key_layer), np.asarray(key_ref_),
                               rtol=5e-2, atol=5e-2)
    print("KERNEL_OK")
</pallas_src>

<mosaic_0001>
module attributes {stable_mosaic.version = 11 : i64} {
  func.func @_encoder_kernel(%arg0: i32, %arg1: memref<2x8x32xf32, #tpu.memory_space<vmem>>, %arg2: memref<96x32xbf16, #tpu.memory_space<vmem>>, %arg3: memref<1x32xf32, #tpu.memory_space<vmem>>, %arg4: memref<96x32xbf16, #tpu.memory_space<vmem>>, %arg5: memref<1x32xf32, #tpu.memory_space<vmem>>, %arg6: memref<96x32xbf16, #tpu.memory_space<vmem>>, %arg7: memref<1x32xf32, #tpu.memory_space<vmem>>, %arg8: memref<96x64xbf16, #tpu.memory_space<vmem>>, %arg9: memref<1x64xf32, #tpu.memory_space<vmem>>, %arg10: memref<192x32xbf16, #tpu.memory_space<vmem>>, %arg11: memref<1x32xf32, #tpu.memory_space<vmem>>, %arg12: memref<1x32xf32, #tpu.memory_space<vmem>>, %arg13: memref<1x32xf32, #tpu.memory_space<vmem>>, %arg14: memref<2x8x32xf32, #tpu.memory_space<vmem>>, %arg15: memref<2x8x32xf32, #tpu.memory_space<vmem>>) attributes {dimension_semantics = [#tpu.dimension_semantics<parallel>], iteration_bounds = array<i64: 1>, scalar_prefetch = 0 : i64, scratch_operands = 0 : i64, tpu.core_type = #tpu.core_type<tc>, window_params = [{transform_indices = @transform_0, window_bounds = array<i64: 2, 8, 32>}, {pipeline_mode = #tpu.pipeline_mode<synchronous>, transform_indices = @transform_1, window_bounds = array<i64: 96, 32>}, {pipeline_mode = #tpu.pipeline_mode<synchronous>, transform_indices = @transform_2, window_bounds = array<i64: 1, 32>}, {pipeline_mode = #tpu.pipeline_mode<synchronous>, transform_indices = @transform_3, window_bounds = array<i64: 96, 32>}, {pipeline_mode = #tpu.pipeline_mode<synchronous>, transform_indices = @transform_4, window_bounds = array<i64: 1, 32>}, {pipeline_mode = #tpu.pipeline_mode<synchronous>, transform_indices = @transform_5, window_bounds = array<i64: 96, 32>}, {pipeline_mode = #tpu.pipeline_mode<synchronous>, transform_indices = @transform_6, window_bounds = array<i64: 1, 32>}, {pipeline_mode = #tpu.pipeline_mode<synchronous>, transform_indices = @transform_7, window_bounds = array<i64: 96, 64>}, {pipeline_mode = #tpu.pipeline_mode<synchronous>, transform_indices = @transform_8, window_bounds = array<i64: 1, 64>}, {pipeline_mode = #tpu.pipeline_mode<synchronous>, transform_indices = @transform_9, window_bounds = array<i64: 192, 32>}, {pipeline_mode = #tpu.pipeline_mode<synchronous>, transform_indices = @transform_10, window_bounds = array<i64: 1, 32>}, {pipeline_mode = #tpu.pipeline_mode<synchronous>, transform_indices = @transform_11, window_bounds = array<i64: 1, 32>}, {pipeline_mode = #tpu.pipeline_mode<synchronous>, transform_indices = @transform_12, window_bounds = array<i64: 1, 32>}, {transform_indices = @transform_13, window_bounds = array<i64: 2, 8, 32>}, {transform_indices = @transform_14, window_bounds = array<i64: 2, 8, 32>}]} {
    %c0 = arith.constant 0 : index
    %c0_0 = arith.constant 0 : index
    %c0_1 = arith.constant 0 : index
    %0 = vector.load %arg1[%c0, %c0_0, %c0_1] : memref<2x8x32xf32, #tpu.memory_space<vmem>>, vector<2x8x32xf32>
    %1 = vector.extract_strided_slice %0 {offsets = [0, 7, 0], sizes = [2, 1, 32], strides = [1, 1, 1]} : vector<2x8x32xf32> to vector<2x1x32xf32>
    %2 = vector.extract_strided_slice %0 {offsets = [0, 0, 0], sizes = [2, 7, 32], strides = [1, 1, 1]} : vector<2x8x32xf32> to vector<2x7x32xf32>
    %3 = tpu.concatenate %1, %2 in 1 : vector<2x1x32xf32>, vector<2x7x32xf32> -> vector<2x8x32xf32>
    %4 = vector.extract_strided_slice %0 {offsets = [0, 1, 0], sizes = [2, 7, 32], strides = [1, 1, 1]} : vector<2x8x32xf32> to vector<2x7x32xf32>
    %5 = vector.extract_strided_slice %0 {offsets = [0, 0, 0], sizes = [2, 1, 32], strides = [1, 1, 1]} : vector<2x8x32xf32> to vector<2x1x32xf32>
    %6 = tpu.concatenate %4, %5 in 1 : vector<2x7x32xf32>, vector<2x1x32xf32> -> vector<2x8x32xf32>
    %7 = tpu.concatenate %3, %0, %6 in 2 : vector<2x8x32xf32>, vector<2x8x32xf32>, vector<2x8x32xf32> -> vector<2x8x96xf32>
    %8 = vector.shape_cast %7 : vector<2x8x96xf32> to vector<16x96xf32>
    %9 = arith.truncf %8 : vector<16x96xf32> to vector<16x96xbf16>
    %c0_2 = arith.constant 0 : index
    %c0_3 = arith.constant 0 : index
    %10 = vector.load %arg2[%c0_2, %c0_3] : memref<96x32xbf16, #tpu.memory_space<vmem>>, vector<96x32xbf16>
    %cst = arith.constant dense<0.000000e+00> : vector<16x32xf32>
    %11 = tpu.matmul %9, %10, %cst {dimension_numbers = #tpu.dot_dimension_numbers<[1], [0], [0], [1], [0, 0, 1, 1], [], []>} : vector<16x96xbf16>, vector<96x32xbf16>, vector<16x32xf32> -> vector<16x32xf32>
    %c0_4 = arith.constant 0 : index
    %c0_5 = arith.constant 0 : index
    %12 = vector.load %arg3[%c0_4, %c0_5] : memref<1x32xf32, #tpu.memory_space<vmem>>, vector<1x32xf32>
    %13 = vector.broadcast %12 : vector<1x32xf32> to vector<16x32xf32>
    %14 = arith.addf %11, %13 : vector<16x32xf32>
    %15 = vector.shape_cast %14 : vector<16x32xf32> to vector<2x8x32xf32>
    %16 = vector.extract_strided_slice %0 {offsets = [0, 7, 0], sizes = [2, 1, 32], strides = [1, 1, 1]} : vector<2x8x32xf32> to vector<2x1x32xf32>
    %17 = vector.extract_strided_slice %0 {offsets = [0, 0, 0], sizes = [2, 7, 32], strides = [1, 1, 1]} : vector<2x8x32xf32> to vector<2x7x32xf32>
    %18 = tpu.concatenate %16, %17 in 1 : vector<2x1x32xf32>, vector<2x7x32xf32> -> vector<2x8x32xf32>
    %19 = vector.extract_strided_slice %0 {offsets = [0, 1, 0], sizes = [2, 7, 32], strides = [1, 1, 1]} : vector<2x8x32xf32> to vector<2x7x32xf32>
    %20 = vector.extract_strided_slice %0 {offsets = [0, 0, 0], sizes = [2, 1, 32], strides = [1, 1, 1]} : vector<2x8x32xf32> to vector<2x1x32xf32>
    %21 = tpu.concatenate %19, %20 in 1 : vector<2x7x32xf32>, vector<2x1x32xf32> -> vector<2x8x32xf32>
    %22 = tpu.concatenate %18, %0, %21 in 2 : vector<2x8x32xf32>, vector<2x8x32xf32>, vector<2x8x32xf32> -> vector<2x8x96xf32>
    %23 = vector.shape_cast %22 : vector<2x8x96xf32> to vector<16x96xf32>
    %24 = arith.truncf %23 : vector<16x96xf32> to vector<16x96xbf16>
    %c0_6 = arith.constant 0 : index
    %c0_7 = arith.constant 0 : index
    %25 = vector.load %arg4[%c0_6, %c0_7] : memref<96x32xbf16, #tpu.memory_space<vmem>>, vector<96x32xbf16>
    %cst_8 = arith.constant dense<0.000000e+00> : vector<16x32xf32>
    %26 = tpu.matmul %24, %25, %cst_8 {dimension_numbers = #tpu.dot_dimension_numbers<[1], [0], [0], [1], [0, 0, 1, 1], [], []>} : vector<16x96xbf16>, vector<96x32xbf16>, vector<16x32xf32> -> vector<16x32xf32>
    %c0_9 = arith.constant 0 : index
    %c0_10 = arith.constant 0 : index
    %27 = vector.load %arg5[%c0_9, %c0_10] : memref<1x32xf32, #tpu.memory_space<vmem>>, vector<1x32xf32>
    %28 = vector.broadcast %27 : vector<1x32xf32> to vector<16x32xf32>
    %29 = arith.addf %26, %28 : vector<16x32xf32>
    %30 = vector.shape_cast %29 : vector<16x32xf32> to vector<2x8x32xf32>
    %31 = vector.extract_strided_slice %0 {offsets = [0, 7, 0], sizes = [2, 1, 32], strides = [1, 1, 1]} : vector<2x8x32xf32> to vector<2x1x32xf32>
    %32 = vector.extract_strided_slice %0 {offsets = [0, 0, 0], sizes = [2, 7, 32], strides = [1, 1, 1]} : vector<2x8x32xf32> to vector<2x7x32xf32>
    %33 = tpu.concatenate %31, %32 in 1 : vector<2x1x32xf32>, vector<2x7x32xf32> -> vector<2x8x32xf32>
    %34 = vector.extract_strided_slice %0 {offsets = [0, 1, 0], sizes = [2, 7, 32], strides = [1, 1, 1]} : vector<2x8x32xf32> to vector<2x7x32xf32>
    %35 = vector.extract_strided_slice %0 {offsets = [0, 0, 0], sizes = [2, 1, 32], strides = [1, 1, 1]} : vector<2x8x32xf32> to vector<2x1x32xf32>
    %36 = tpu.concatenate %34, %35 in 1 : vector<2x7x32xf32>, vector<2x1x32xf32> -> vector<2x8x32xf32>
    %37 = tpu.concatenate %33, %0, %36 in 2 : vector<2x8x32xf32>, vector<2x8x32xf32>, vector<2x8x32xf32> -> vector<2x8x96xf32>
    %38 = vector.shape_cast %37 : vector<2x8x96xf32> to vector<16x96xf32>
    %39 = arith.truncf %38 : vector<16x96xf32> to vector<16x96xbf16>
    %c0_11 = arith.constant 0 : index
    %c0_12 = arith.constant 0 : index
    %40 = vector.load %arg6[%c0_11, %c0_12] : memref<96x32xbf16, #tpu.memory_space<vmem>>, vector<96x32xbf16>
    %cst_13 = arith.constant dense<0.000000e+00> : vector<16x32xf32>
    %41 = tpu.matmul %39, %40, %cst_13 {dimension_numbers = #tpu.dot_dimension_numbers<[1], [0], [0], [1], [0, 0, 1, 1], [], []>} : vector<16x96xbf16>, vector<96x32xbf16>, vector<16x32xf32> -> vector<16x32xf32>
    %c0_14 = arith.constant 0 : index
    %c0_15 = arith.constant 0 : index
    %42 = vector.load %arg7[%c0_14, %c0_15] : memref<1x32xf32, #tpu.memory_space<vmem>>, vector<1x32xf32>
    %43 = vector.broadcast %42 : vector<1x32xf32> to vector<16x32xf32>
    %44 = arith.addf %41, %43 : vector<16x32xf32>
    %45 = vector.shape_cast %44 : vector<16x32xf32> to vector<2x8x32xf32>
    %c0_16 = arith.constant 0 : index
    %c0_17 = arith.constant 0 : index
    %c0_18 = arith.constant 0 : index
    %46 = vector.load %arg15[%c0_16, %c0_17, %c0_18] : memref<2x8x32xf32, #tpu.memory_space<vmem>>, vector<2x8x32xf32>
    tpu.vector_store %arg15[%c0_16, %c0_17, %c0_18], %30 {strides = array<i32>} : memref<2x8x32xf32, #tpu.memory_space<vmem>>, vector<2x8x32xf32>,
    %47 = vector.extract_strided_slice %15 {offsets = [0, 0, 0], sizes = [2, 8, 8], strides = [1, 1, 1]} : vector<2x8x32xf32> to vector<2x8x8xf32>
    %cst_19 = arith.constant 5.000000e-01 : f32
    %48 = vector.broadcast %cst_19 : f32 to vector<2x8x8xf32>
    %49 = arith.mulf %47, %48 : vector<2x8x8xf32>
    %50 = arith.truncf %49 : vector<2x8x8xf32> to vector<2x8x8xbf16>
    %51 = vector.extract_strided_slice %30 {offsets = [0, 0, 0], sizes = [2, 8, 8], strides = [1, 1, 1]} : vector<2x8x32xf32> to vector<2x8x8xf32>
    %52 = arith.truncf %51 : vector<2x8x8xf32> to vector<2x8x8xbf16>
    %53 = vector.extract_strided_slice %45 {offsets = [0, 0, 0], sizes = [2, 8, 8], strides = [1, 1, 1]} : vector<2x8x32xf32> to vector<2x8x8xf32>
    %54 = arith.truncf %53 : vector<2x8x8xf32> to vector<2x8x8xbf16>
    "tpu.trace_start"() <{level = 10 : i32, message = "bqe,bke->bqk"}> : () -> ()
    %cst_20 = arith.constant dense<0.000000e+00> : vector<2x8x8xf32>
    %55 = tpu.matmul %50, %52, %cst_20 {dimension_numbers = #tpu.dot_dimension_numbers<[2], [2], [1], [1], [0, 0, 0, 1, 1, 1], [0], [0]>} : vector<2x8x8xbf16>, vector<2x8x8xbf16>, vector<2x8x8xf32> -> vector<2x8x8xf32>
    "tpu.trace_stop"() : () -> ()
    %cst_21 = arith.constant dense<0xFF800000> : vector<2x8xf32>
    %56 = vector.multi_reduction <maximumf>, %55, %cst_21 [2] : vector<2x8x8xf32> to vector<2x8xf32>
    %57 = vector.shape_cast %56 : vector<2x8xf32> to vector<2x8x1xf32>
    %58 = vector.broadcast %57 : vector<2x8x1xf32> to vector<2x8x8xf32>
    %59 = arith.subf %55, %58 : vector<2x8x8xf32>
    %60 = math.exp %59 : vector<2x8x8xf32>
    %cst_22 = arith.constant dense<0.000000e+00> : vector<2x8xf32>
    %61 = vector.multi_reduction <add>, %60, %cst_22 [2] : vector<2x8x8xf32> to vector<2x8xf32>
    %62 = vector.shape_cast %61 : vector<2x8xf32> to vector<2x8x1xf32>
    %63 = tpu.reciprocal %62 {approx = true} : vector<2x8x1xf32> -> vector<2x8x1xf32>
    %64 = vector.broadcast %63 : vector<2x8x1xf32> to vector<2x8x8xf32>
    %65 = arith.mulf %60, %64 : vector<2x8x8xf32>
    %66 = arith.truncf %65 : vector<2x8x8xf32> to vector<2x8x8xbf16>
    "tpu.trace_start"() <{level = 10 : i32, message = "bqk,bke->bqe"}> : () -> ()
    %cst_23 = arith.constant dense<0.000000e+00> : vector<2x8x8xf32>
    %67 = tpu.matmul %66, %54, %cst_23 {dimension_numbers = #tpu.dot_dimension_numbers<[2], [1], [1], [2], [0, 0, 0, 1, 1, 2], [0], [0]>} : vector<2x8x8xbf16>, vector<2x8x8xbf16>, vector<2x8x8xf32> -> vector<2x8x8xf32>
    "tpu.trace_stop"() : () -> ()
    %68 = vector.extract_strided_slice %15 {offsets = [0, 0, 8], sizes = [2, 8, 8], strides = [1, 1, 1]} : vector<2x8x32xf32> to vector<2x8x8xf32>
    %cst_24 = arith.constant 5.000000e-01 : f32
    %69 = vector.broadcast %cst_24 : f32 to vector<2x8x8xf32>
    %70 = arith.mulf %68, %69 : vector<2x8x8xf32>
    %71 = arith.truncf %70 : vector<2x8x8xf32> to vector<2x8x8xbf16>
    %72 = vector.extract_strided_slice %30 {offsets = [0, 0, 8], sizes = [2, 8, 8], strides = [1, 1, 1]} : vector<2x8x32xf32> to vector<2x8x8xf32>
    %73 = arith.truncf %72 : vector<2x8x8xf32> to vector<2x8x8xbf16>
    %74 = vector.extract_strided_slice %45 {offsets = [0, 0, 8], sizes = [2, 8, 8], strides = [1, 1, 1]} : vector<2x8x32xf32> to vector<2x8x8xf32>
    %75 = arith.truncf %74 : vector<2x8x8xf32> to vector<2x8x8xbf16>
    "tpu.trace_start"() <{level = 10 : i32, message = "bqe,bke->bqk"}> : () -> ()
    %cst_25 = arith.constant dense<0.000000e+00> : vector<2x8x8xf32>
    %76 = tpu.matmul %71, %73, %cst_25 {dimension_numbers = #tpu.dot_dimension_numbers<[2], [2], [1], [1], [0, 0, 0, 1, 1, 1], [0], [0]>} : vector<2x8x8xbf16>, vector<2x8x8xbf16>, vector<2x8x8xf32> -> vector<2x8x8xf32>
    "tpu.trace_stop"() : () -> ()
    %cst_26 = arith.constant dense<0xFF800000> : vector<2x8xf32>
    %77 = vector.multi_reduction <maximumf>, %76, %cst_26 [2] : vector<2x8x8xf32> to vector<2x8xf32>
    %78 = vector.shape_cast %77 : vector<2x8xf32> to vector<2x8x1xf32>
    %79 = vector.broadcast %78 : vector<2x8x1xf32> to vector<2x8x8xf32>
    %80 = arith.subf %76, %79 : vector<2x8x8xf32>
    %81 = math.exp %80 : vector<2x8x8xf32>
    %cst_27 = arith.constant dense<0.000000e+00> : vector<2x8xf32>
    %82 = vector.multi_reduction <add>, %81, %cst_27 [2] : vector<2x8x8xf32> to vector<2x8xf32>
    %83 = vector.shape_cast %82 : vector<2x8xf32> to vector<2x8x1xf32>
    %84 = tpu.reciprocal %83 {approx = true} : vector<2x8x1xf32> -> vector<2x8x1xf32>
    %85 = vector.broadcast %84 : vector<2x8x1xf32> to vector<2x8x8xf32>
    %86 = arith.mulf %81, %85 : vector<2x8x8xf32>
    %87 = arith.truncf %86 : vector<2x8x8xf32> to vector<2x8x8xbf16>
    "tpu.trace_start"() <{level = 10 : i32, message = "bqk,bke->bqe"}> : () -> ()
    %cst_28 = arith.constant dense<0.000000e+00> : vector<2x8x8xf32>
    %88 = tpu.matmul %87, %75, %cst_28 {dimension_numbers = #tpu.dot_dimension_numbers<[2], [1], [1], [2], [0, 0, 0, 1, 1, 2], [0], [0]>} : vector<2x8x8xbf16>, vector<2x8x8xbf16>, vector<2x8x8xf32> -> vector<2x8x8xf32>
    "tpu.trace_stop"() : () -> ()
    %89 = vector.extract_strided_slice %15 {offsets = [0, 0, 16], sizes = [2, 8, 8], strides = [1, 1, 1]} : vector<2x8x32xf32> to vector<2x8x8xf32>
    %cst_29 = arith.constant 5.000000e-01 : f32
    %90 = vector.broadcast %cst_29 : f32 to vector<2x8x8xf32>
    %91 = arith.mulf %89, %90 : vector<2x8x8xf32>
    %92 = arith.truncf %91 : vector<2x8x8xf32> to vector<2x8x8xbf16>
    %93 = vector.extract_strided_slice %30 {offsets = [0, 0, 16], sizes = [2, 8, 8], strides = [1, 1, 1]} : vector<2x8x32xf32> to vector<2x8x8xf32>
    %94 = arith.truncf %93 : vector<2x8x8xf32> to vector<2x8x8xbf16>
    %95 = vector.extract_strided_slice %45 {offsets = [0, 0, 16], sizes = [2, 8, 8], strides = [1, 1, 1]} : vector<2x8x32xf32> to vector<2x8x8xf32>
    %96 = arith.truncf %95 : vector<2x8x8xf32> to vector<2x8x8xbf16>
    "tpu.trace_start"() <{level = 10 : i32, message = "bqe,bke->bqk"}> : () -> ()
    %cst_30 = arith.constant dense<0.000000e+00> : vector<2x8x8xf32>
    %97 = tpu.matmul %92, %94, %cst_30 {dimension_numbers = #tpu.dot_dimension_numbers<[2], [2], [1], [1], [0, 0, 0, 1, 1, 1], [0], [0]>} : vector<2x8x8xbf16>, vector<2x8x8xbf16>, vector<2x8x8xf32> -> vector<2x8x8xf32>
    "tpu.trace_stop"() : () -> ()
    %cst_31 = arith.constant dense<0xFF800000> : vector<2x8xf32>
    %98 = vector.multi_reduction <maximumf>, %97, %cst_31 [2] : vector<2x8x8xf32> to vector<2x8xf32>
    %99 = vector.shape_cast %98 : vector<2x8xf32> to vector<2x8x1xf32>
    %100 = vector.broadcast %99 : vector<2x8x1xf32> to vector<2x8x8xf32>
    %101 = arith.subf %97, %100 : vector<2x8x8xf32>
    %102 = math.exp %101 : vector<2x8x8xf32>
    %cst_32 = arith.constant dense<0.000000e+00> : vector<2x8xf32>
    %103 = vector.multi_reduction <add>, %102, %cst_32 [2] : vector<2x8x8xf32> to vector<2x8xf32>
    %104 = vector.shape_cast %103 : vector<2x8xf32> to vector<2x8x1xf32>
    %105 = tpu.reciprocal %104 {approx = true} : vector<2x8x1xf32> -> vector<2x8x1xf32>
    %106 = vector.broadcast %105 : vector<2x8x1xf32> to vector<2x8x8xf32>
    %107 = arith.mulf %102, %106 : vector<2x8x8xf32>
    %108 = arith.truncf %107 : vector<2x8x8xf32> to vector<2x8x8xbf16>
    "tpu.trace_start"() <{level = 10 : i32, message = "bqk,bke->bqe"}> : () -> ()
    %cst_33 = arith.constant dense<0.000000e+00> : vector<2x8x8xf32>
    %109 = tpu.matmul %108, %96, %cst_33 {dimension_numbers = #tpu.dot_dimension_numbers<[2], [1], [1], [2], [0, 0, 0, 1, 1, 2], [0], [0]>} : vector<2x8x8xbf16>, vector<2x8x8xbf16>, vector<2x8x8xf32> -> vector<2x8x8xf32>
    "tpu.trace_stop"() : () -> ()
    %110 = vector.extract_strided_slice %15 {offsets = [0, 0, 24], sizes = [2, 8, 8], strides = [1, 1, 1]} : vector<2x8x32xf32> to vector<2x8x8xf32>
    %cst_34 = arith.constant 5.000000e-01 : f32
    %111 = vector.broadcast %cst_34 : f32 to vector<2x8x8xf32>
    %112 = arith.mulf %110, %111 : vector<2x8x8xf32>
    %113 = arith.truncf %112 : vector<2x8x8xf32> to vector<2x8x8xbf16>
    %114 = vector.extract_strided_slice %30 {offsets = [0, 0, 24], sizes = [2, 8, 8], strides = [1, 1, 1]} : vector<2x8x32xf32> to vector<2x8x8xf32>
    %115 = arith.truncf %114 : vector<2x8x8xf32> to vector<2x8x8xbf16>
    %116 = vector.extract_strided_slice %45 {offsets = [0, 0, 24], sizes = [2, 8, 8], strides = [1, 1, 1]} : vector<2x8x32xf32> to vector<2x8x8xf32>
    %117 = arith.truncf %116 : vector<2x8x8xf32> to vector<2x8x8xbf16>
    "tpu.trace_start"() <{level = 10 : i32, message = "bqe,bke->bqk"}> : () -> ()
    %cst_35 = arith.constant dense<0.000000e+00> : vector<2x8x8xf32>
    %118 = tpu.matmul %113, %115, %cst_35 {dimension_numbers = #tpu.dot_dimension_numbers<[2], [2], [1], [1], [0, 0, 0, 1, 1, 1], [0], [0]>} : vector<2x8x8xbf16>, vector<2x8x8xbf16>, vector<2x8x8xf32> -> vector<2x8x8xf32>
    "tpu.trace_stop"() : () -> ()
    %cst_36 = arith.constant dense<0xFF800000> : vector<2x8xf32>
    %119 = vector.multi_reduction <maximumf>, %118, %cst_36 [2] : vector<2x8x8xf32> to vector<2x8xf32>
    %120 = vector.shape_cast %119 : vector<2x8xf32> to vector<2x8x1xf32>
    %121 = vector.broadcast %120 : vector<2x8x1xf32> to vector<2x8x8xf32>
    %122 = arith.subf %118, %121 : vector<2x8x8xf32>
    %123 = math.exp %122 : vector<2x8x8xf32>
    %cst_37 = arith.constant dense<0.000000e+00> : vector<2x8xf32>
    %124 = vector.multi_reduction <add>, %123, %cst_37 [2] : vector<2x8x8xf32> to vector<2x8xf32>
    %125 = vector.shape_cast %124 : vector<2x8xf32> to vector<2x8x1xf32>
    %126 = tpu.reciprocal %125 {approx = true} : vector<2x8x1xf32> -> vector<2x8x1xf32>
    %127 = vector.broadcast %126 : vector<2x8x1xf32> to vector<2x8x8xf32>
    %128 = arith.mulf %123, %127 : vector<2x8x8xf32>
    %129 = arith.truncf %128 : vector<2x8x8xf32> to vector<2x8x8xbf16>
    "tpu.trace_start"() <{level = 10 : i32, message = "bqk,bke->bqe"}> : () -> ()
    %cst_38 = arith.constant dense<0.000000e+00> : vector<2x8x8xf32>
    %130 = tpu.matmul %129, %117, %cst_38 {dimension_numbers = #tpu.dot_dimension_numbers<[2], [1], [1], [2], [0, 0, 0, 1, 1, 2], [0], [0]>} : vector<2x8x8xbf16>, vector<2x8x8xbf16>, vector<2x8x8xf32> -> vector<2x8x8xf32>
    "tpu.trace_stop"() : () -> ()
    %131 = tpu.concatenate %67, %88, %109, %130 in 2 : vector<2x8x8xf32>, vector<2x8x8xf32>, vector<2x8x8xf32>, vector<2x8x8xf32> -> vector<2x8x32xf32>
    %132 = vector.extract_strided_slice %131 {offsets = [0, 7, 0], sizes = [2, 1, 32], strides = [1, 1, 1]} : vector<2x8x32xf32> to vector<2x1x32xf32>
    %133 = vector.extract_strided_slice %131 {offsets = [0, 0, 0], sizes = [2, 7, 32], strides = [1, 1, 1]} : vector<2x8x32xf32> to vector<2x7x32xf32>
    %134 = tpu.concatenate %132, %133 in 1 : vector<2x1x32xf32>, vector<2x7x32xf32> -> vector<2x8x32xf32>
    %135 = vector.extract_strided_slice %131 {offsets = [0, 1, 0], sizes = [2, 7, 32], strides = [1, 1, 1]} : vector<2x8x32xf32> to vector<2x7x32xf32>
    %136 = vector.extract_strided_slice %131 {offsets = [0, 0, 0], sizes = [2, 1, 32], strides = [1, 1, 1]} : vector<2x8x32xf32> to vector<2x1x32xf32>
    %137 = tpu.concatenate %135, %136 in 1 : vector<2x7x32xf32>, vector<2x1x32xf32> -> vector<2x8x32xf32>
    %138 = tpu.concatenate %134, %131, %137 in 2 : vector<2x8x32xf32>, vector<2x8x32xf32>, vector<2x8x32xf32> -> vector<2x8x96xf32>
    %139 = vector.shape_cast %138 : vector<2x8x96xf32> to vector<16x96xf32>
    %140 = arith.truncf %139 : vector<16x96xf32> to vector<16x96xbf16>
    %c0_39 = arith.constant 0 : index
    %c0_40 = arith.constant 0 : index
    %141 = vector.load %arg8[%c0_39, %c0_40] : memref<96x64xbf16, #tpu.memory_space<vmem>>, vector<96x64xbf16>
    %cst_41 = arith.constant dense<0.000000e+00> : vector<16x64xf32>
    %142 = tpu.matmul %140, %141, %cst_41 {dimension_numbers = #tpu.dot_dimension_numbers<[1], [0], [0], [1], [0, 0, 1, 1], [], []>} : vector<16x96xbf16>, vector<96x64xbf16>, vector<16x64xf32> -> vector<16x64xf32>
    %c0_42 = arith.constant 0 : index
    %c0_43 = arith.constant 0 : index
    %143 = vector.load %arg9[%c0_42, %c0_43] : memref<1x64xf32, #tpu.memory_space<vmem>>, vector<1x64xf32>
    %144 = vector.broadcast %143 : vector<1x64xf32> to vector<16x64xf32>
    %145 = arith.addf %142, %144 : vector<16x64xf32>
    %146 = vector.shape_cast %145 : vector<16x64xf32> to vector<2x8x64xf32>
    %cst_44 = arith.constant 0.000000e+00 : f32
    %147 = vector.broadcast %cst_44 : f32 to vector<2x8x64xf32>
    %148 = arith.maximumf %146, %147 : vector<2x8x64xf32>
    %149 = vector.extract_strided_slice %148 {offsets = [0, 7, 0], sizes = [2, 1, 64], strides = [1, 1, 1]} : vector<2x8x64xf32> to vector<2x1x64xf32>
    %150 = vector.extract_strided_slice %148 {offsets = [0, 0, 0], sizes = [2, 7, 64], strides = [1, 1, 1]} : vector<2x8x64xf32> to vector<2x7x64xf32>
    %151 = tpu.concatenate %149, %150 in 1 : vector<2x1x64xf32>, vector<2x7x64xf32> -> vector<2x8x64xf32>
    %152 = vector.extract_strided_slice %148 {offsets = [0, 1, 0], sizes = [2, 7, 64], strides = [1, 1, 1]} : vector<2x8x64xf32> to vector<2x7x64xf32>
    %153 = vector.extract_strided_slice %148 {offsets = [0, 0, 0], sizes = [2, 1, 64], strides = [1, 1, 1]} : vector<2x8x64xf32> to vector<2x1x64xf32>
    %154 = tpu.concatenate %152, %153 in 1 : vector<2x7x64xf32>, vector<2x1x64xf32> -> vector<2x8x64xf32>
    %155 = tpu.concatenate %151, %148, %154 in 2 : vector<2x8x64xf32>, vector<2x8x64xf32>, vector<2x8x64xf32> -> vector<2x8x192xf32>
    %156 = vector.shape_cast %155 : vector<2x8x192xf32> to vector<16x192xf32>
    %157 = arith.truncf %156 : vector<16x192xf32> to vector<16x192xbf16>
    %c0_45 = arith.constant 0 : index
    %c0_46 = arith.constant 0 : index
    %158 = vector.load %arg10[%c0_45, %c0_46] : memref<192x32xbf16, #tpu.memory_space<vmem>>, vector<192x32xbf16>
    %cst_47 = arith.constant dense<0.000000e+00> : vector<16x32xf32>
    %159 = tpu.matmul %157, %158, %cst_47 {dimension_numbers = #tpu.dot_dimension_numbers<[1], [0], [0], [1], [0, 0, 1, 1], [], []>} : vector<16x192xbf16>, vector<192x32xbf16>, vector<16x32xf32> -> vector<16x32xf32>
    %c0_48 = arith.constant 0 : index
    %c0_49 = arith.constant 0 : index
    %160 = vector.load %arg11[%c0_48, %c0_49] : memref<1x32xf32, #tpu.memory_space<vmem>>, vector<1x32xf32>
    %161 = vector.broadcast %160 : vector<1x32xf32> to vector<16x32xf32>
    %162 = arith.addf %159, %161 : vector<16x32xf32>
    %163 = vector.shape_cast %162 : vector<16x32xf32> to vector<2x8x32xf32>
    %164 = vector.shape_cast %163 : vector<2x8x32xf32> to vector<16x32xf32>
    %cst_50 = arith.constant dense<0.000000e+00> : vector<16xf32>
    %165 = vector.multi_reduction <add>, %164, %cst_50 [1] : vector<16x32xf32> to vector<16xf32>
    %166 = vector.shape_cast %165 : vector<16xf32> to vector<16x1xf32>
    %cst_51 = arith.constant 3.200000e+01 : f32
    %167 = vector.broadcast %cst_51 : f32 to vector<16x1xf32>
    %168 = arith.divf %166, %167 : vector<16x1xf32>
    %169 = vector.broadcast %168 : vector<16x1xf32> to vector<16x32xf32>
    %170 = arith.subf %164, %169 : vector<16x32xf32>
    %171 = arith.mulf %170, %170 : vector<16x32xf32>
    %cst_52 = arith.constant dense<0.000000e+00> : vector<16xf32>
    %172 = vector.multi_reduction <add>, %171, %cst_52 [1] : vector<16x32xf32> to vector<16xf32>
    %173 = vector.shape_cast %172 : vector<16xf32> to vector<16x1xf32>
    %cst_53 = arith.constant 3.200000e+01 : f32
    %174 = vector.broadcast %cst_53 : f32 to vector<16x1xf32>
    %175 = arith.divf %173, %174 : vector<16x1xf32>
    %176 = vector.broadcast %168 : vector<16x1xf32> to vector<16x32xf32>
    %177 = arith.subf %164, %176 : vector<16x32xf32>
    %cst_54 = arith.constant 9.99999974E-6 : f32
    %178 = vector.broadcast %cst_54 : f32 to vector<16x1xf32>
    %179 = arith.addf %175, %178 : vector<16x1xf32>
    %180 = math.rsqrt %179 : vector<16x1xf32>
    %181 = vector.broadcast %180 : vector<16x1xf32> to vector<16x32xf32>
    %182 = arith.mulf %177, %181 : vector<16x32xf32>
    %c0_55 = arith.constant 0 : index
    %c0_56 = arith.constant 0 : index
    %183 = vector.load %arg12[%c0_55, %c0_56] : memref<1x32xf32, #tpu.memory_space<vmem>>, vector<1x32xf32>
    %184 = vector.broadcast %183 : vector<1x32xf32> to vector<16x32xf32>
    %185 = arith.mulf %182, %184 : vector<16x32xf32>
    %c0_57 = arith.constant 0 : index
    %c0_58 = arith.constant 0 : index
    %186 = vector.load %arg13[%c0_57, %c0_58] : memref<1x32xf32, #tpu.memory_space<vmem>>, vector<1x32xf32>
    %187 = vector.broadcast %186 : vector<1x32xf32> to vector<16x32xf32>
    %188 = arith.addf %185, %187 : vector<16x32xf32>
    %189 = vector.shape_cast %188 : vector<16x32xf32> to vector<2x8x32xf32>
    %190 = arith.addf %189, %0 : vector<2x8x32xf32>
    %c0_59 = arith.constant 0 : index
    %c0_60 = arith.constant 0 : index
    %c0_61 = arith.constant 0 : index
    %191 = vector.load %arg14[%c0_59, %c0_60, %c0_61] : memref<2x8x32xf32, #tpu.memory_space<vmem>>, vector<2x8x32xf32>
    tpu.vector_store %arg14[%c0_59, %c0_60, %c0_61], %190 {strides = array<i32>} : memref<2x8x32xf32, #tpu.memory_space<vmem>>, vector<2x8x32xf32>,
    return
  }
  func.func @transform_0(%arg0: i32) -> (i32, i32, i32) {
    %c0_i32 = arith.constant 0 : i32
    %c0_i32_0 = arith.constant 0 : i32
    %c0_i32_1 = arith.constant 0 : i32
    return %arg0, %c0_i32, %c0_i32_0 : i32, i32, i32
  }
  func.func @transform_1(%arg0: i32) -> (i32, i32) {
    %c0_i32 = arith.constant 0 : i32
    %c0_i32_0 = arith.constant 0 : i32
    %c0_i32_1 = arith.constant 0 : i32
    return %c0_i32, %c0_i32_0 : i32, i32
  }
  func.func @transform_2(%arg0: i32) -> (i32, i32) {
    %c0_i32 = arith.constant 0 : i32
    %c0_i32_0 = arith.constant 0 : i32
    %c0_i32_1 = arith.constant 0 : i32
    return %c0_i32, %c0_i32_0 : i32, i32
  }
  func.func @transform_3(%arg0: i32) -> (i32, i32) {
    %c0_i32 = arith.constant 0 : i32
    %c0_i32_0 = arith.constant 0 : i32
    %c0_i32_1 = arith.constant 0 : i32
    return %c0_i32, %c0_i32_0 : i32, i32
  }
  func.func @transform_4(%arg0: i32) -> (i32, i32) {
    %c0_i32 = arith.constant 0 : i32
    %c0_i32_0 = arith.constant 0 : i32
    %c0_i32_1 = arith.constant 0 : i32
    return %c0_i32, %c0_i32_0 : i32, i32
  }
  func.func @transform_5(%arg0: i32) -> (i32, i32) {
    %c0_i32 = arith.constant 0 : i32
    %c0_i32_0 = arith.constant 0 : i32
    %c0_i32_1 = arith.constant 0 : i32
    return %c0_i32, %c0_i32_0 : i32, i32
  }
  func.func @transform_6(%arg0: i32) -> (i32, i32) {
    %c0_i32 = arith.constant 0 : i32
    %c0_i32_0 = arith.constant 0 : i32
    %c0_i32_1 = arith.constant 0 : i32
    return %c0_i32, %c0_i32_0 : i32, i32
  }
  func.func @transform_7(%arg0: i32) -> (i32, i32) {
    %c0_i32 = arith.constant 0 : i32
    %c0_i32_0 = arith.constant 0 : i32
    %c0_i32_1 = arith.constant 0 : i32
    return %c0_i32, %c0_i32_0 : i32, i32
  }
  func.func @transform_8(%arg0: i32) -> (i32, i32) {
    %c0_i32 = arith.constant 0 : i32
    %c0_i32_0 = arith.constant 0 : i32
    %c0_i32_1 = arith.constant 0 : i32
    return %c0_i32, %c0_i32_0 : i32, i32
  }
  func.func @transform_9(%arg0: i32) -> (i32, i32) {
    %c0_i32 = arith.constant 0 : i32
    %c0_i32_0 = arith.constant 0 : i32
    %c0_i32_1 = arith.constant 0 : i32
    return %c0_i32, %c0_i32_0 : i32, i32
  }
  func.func @transform_10(%arg0: i32) -> (i32, i32) {
    %c0_i32 = arith.constant 0 : i32
    %c0_i32_0 = arith.constant 0 : i32
    %c0_i32_1 = arith.constant 0 : i32
    return %c0_i32, %c0_i32_0 : i32, i32
  }
  func.func @transform_11(%arg0: i32) -> (i32, i32) {
    %c0_i32 = arith.constant 0 : i32
    %c0_i32_0 = arith.constant 0 : i32
    %c0_i32_1 = arith.constant 0 : i32
    return %c0_i32, %c0_i32_0 : i32, i32
  }
  func.func @transform_12(%arg0: i32) -> (i32, i32) {
    %c0_i32 = arith.constant 0 : i32
    %c0_i32_0 = arith.constant 0 : i32
    %c0_i32_1 = arith.constant 0 : i32
    return %c0_i32, %c0_i32_0 : i32, i32
  }
  func.func @transform_13(%arg0: i32) -> (i32, i32, i32) {
    %c0_i32 = arith.constant 0 : i32
    %c0_i32_0 = arith.constant 0 : i32
    %c0_i32_1 = arith.constant 0 : i32
    return %arg0, %c0_i32, %c0_i32_0 : i32, i32, i32
  }
  func.func @transform_14(%arg0: i32) -> (i32, i32, i32) {
    %c0_i32 = arith.constant 0 : i32
    %c0_i32_0 = arith.constant 0 : i32
    %c0_i32_1 = arith.constant 0 : i32
    return %arg0, %c0_i32, %c0_i32_0 : i32, i32, i32
  }
}

</mosaic_0001>

<bundles_post_ra>
// kernel: tpu_custom_call.1
= control target key start
LH: loop header
LB: loop body
LE: loop exit
PB: predicated region body
PF: predicated region fallthrough
CT: control target
= control target key end

     0   :  { %20 = vsyncpa [#allocation3], 0  ;;  %v2144_v5 = vmov 0.0   ;;  %s2145_s23 = smov 32   ;;  %s2146_s28 = smov 64   ;;  %vm2147_vm0 = vmmov 0   ;;  %s2642_s0 = inlined_call_operand.vmem [shape: f32[2,8,32], index: 0, kind: input, shape index: {}]   ;;  %s2643_s1 = inlined_call_operand.vmem [shape: bf16[96,32], index: 1, kind: input, shape index: {}]   ;;  %s2644_s2 = inlined_call_operand.vmem [shape: f32[1,32], index: 2, kind: input, shape index: {}]   ;;  %s2645_s3 = inlined_call_operand.vmem [shape: bf16[96,32], index: 3, kind: input, shape index: {}]   ;;  %s2646_s4 = inlined_call_operand.vmem [shape: f32[1,32], index: 4, kind: input, shape index: {}]   ;;  %s2647_s5 = inlined_call_operand.vmem [shape: bf16[96,32], index: 5, kind: input, shape index: {}]   ;;  %s2648_s6 = inlined_call_operand.vmem [shape: f32[1,32], index: 6, kind: input, shape index: {}]   ;;  %s2649_s7 = inlined_call_operand.vmem [shape: bf16[96,64], index: 7, kind: input, shape index: {}]   ;;  %s2650_s8 = inlined_call_operand.vmem [shape: f32[1,64], index: 8, kind: input, shape index: {}]   ;;  %s2651_s9 = inlined_call_operand.vmem [shape: bf16[192,32], index: 9, kind: input, shape index: {}]   ;;  %s2652_s10 = inlined_call_operand.vmem [shape: f32[1,32], index: 10, kind: input, shape index: {}]   ;;  %s2653_s11 = inlined_call_operand.vmem [shape: f32[1,32], index: 11, kind: input, shape index: {}]   ;;  %s2654_s12 = inlined_call_operand.vmem [shape: f32[1,32], index: 12, kind: input, shape index: {}]   ;;  %s2655_s13 = inlined_call_operand.hbm [shape: f32[2,8,32], index: 13, kind: output, shape index: {0}]   ;;  %s2656_s14 = inlined_call_operand.hbm [shape: f32[2,8,32], index: 14, kind: output, shape index: {1}]  }
   0x1   :  { %v2236_v0 = vld [vmem:[%s2642_s0] sm:$0xff]  ;;  %v2241_v1 = vld [vmem:[%s2642_s0 + $0x8] sm:$0xff]  ;;  %1808 = vmatprep.subr.bf16.mxu1 %v2144_v5  ;;  %1840 = vmatprep.subr.bf16.mxu0 %v2144_v5  ;;  %v2026_v11 = vld [vmem:[%s2643_s1 + $0x10] sm:$0xff]  }
   0x2   :  { %v2022_v2 = vld [vmem:[%s2643_s1] sm:$0xff]   ;;  %v1982_v3 = vpack.i.bf16 %v2241_v1, %v2236_v0  ;;  %v60_v4 = vrot.slane %v2236_v0, 1  ;;  %v61_v7 = vrot.slane %v2241_v1, 1  ;;  %v2024_v8 = vld [vmem:[%s2643_s1 + $0x8] sm:$0xff]   ;;  %v2027_v12 = vld [vmem:[%s2647_s5 + $0x10] sm:$0xff]   ;;  %1820 = vmatprep.mubr.msk.bf16.mxu1 %vm2147_vm0, %v2144_v5  ;;  %1852 = vmatprep.mubr.msk.bf16.mxu0 %vm2147_vm0, %v2144_v5 }
   0x3   :  { %v2023_v6 = vld [vmem:[%s2647_s5] sm:$0xff]   ;;  %1809 = vmatpush3.bf16.msra.mxu1 %v2022_v2  ;;  %v2025_v10 = vld [vmem:[%s2647_s5 + $0x8] sm:$0xff]   ;;  %v2028_v13 = vld [vmem:[%s2643_s1 + $0x18] sm:$0xff]  }
   0x4   :  { %1983 = vrot.lane.b32.xlu0 %v1982_v3, %s2145_s23  ;;  %1841 = vmatpush3.bf16.msra.mxu0 %v2023_v6  ;;  %v1987_v9 = vpack.i.bf16 %v61_v7, %v60_v4  ;;  %v2029_v14 = vld [vmem:[%s2647_s5 + $0x18] sm:$0xff]   ;;  %v2030_v15 = vld [vmem:[%s2643_s1 + $0x20] sm:$0xff]   ;;  %v2032_v17 = vld [vmem:[%s2643_s1 + $0x28] sm:$0xff]  }
   0x5   :  { %1810 = vmatprep.subr.bf16.mxu1 %v2144_v5  ;;  %1842 = vmatprep.subr.bf16.mxu0 %v2144_v5  ;;  %v2031_v16 = vld [vmem:[%s2647_s5 + $0x20] sm:$0xff]   ;;  %v2033_v18 = vld [vmem:[%s2647_s5 + $0x28] sm:$0xff]  }
   0x7   :  { %1811 = vmatpush3.bf16.msra.mxu1 %v2024_v8 }
   0x8   :  { %1988 = vrot.lane.b32.xlu0 %v1987_v9, %s2146_s28  ;;  %1843 = vmatpush3.bf16.msra.mxu0 %v2025_v10 }
   0x9   :  { %1812 = vmatprep.subr.bf16.mxu1 %v2144_v5  ;;  %1844 = vmatprep.subr.bf16.mxu0 %v2144_v5 }
   0xb   :  { %1813 = vmatpush3.bf16.msra.mxu1 %v2026_v11 }
   0xc   :  { %1845 = vmatpush3.bf16.msra.mxu0 %v2027_v12  ;;  %1814 = vmatprep.subr.bf16.mxu1 %v2144_v5 }
   0xd   :  { %1846 = vmatprep.subr.bf16.mxu0 %v2144_v5 }
   0xf   :  { %1815 = vmatpush3.bf16.msra.mxu1 %v2028_v13 }
  0x10   :  { %1847 = vmatpush3.bf16.msra.mxu0 %v2029_v14  ;;  %1816 = vmatprep.subr.bf16.mxu1 %v2144_v5 }
  0x11   :  { %1848 = vmatprep.subr.bf16.mxu0 %v2144_v5 }
  0x13   :  { %1817 = vmatpush3.bf16.msra.mxu1 %v2030_v15 }
  0x14   :  { %1849 = vmatpush3.bf16.msra.mxu0 %v2031_v16  ;;  %1818 = vmatprep.subr.bf16.mxu1 %v2144_v5 }
  0x15   :  { %1850 = vmatprep.subr.bf16.mxu0 %v2144_v5 }
  0x17   :  { %1819 = vmatpush3.bf16.msra.mxu1 %v2032_v17 }
  0x18   :  { %1851 = vmatpush3.bf16.msra.mxu0 %v2033_v18  ;;  %1824 = vmatprep.subr.bf16.mxu1 %v2144_v5 }
  0x19   :  { %1856 = vmatprep.subr.bf16.mxu0 %v2144_v5 }
  0x1a   :  { %21 = vsyncpa [#allocation5], 0  ;;  %v54_v20 = vrot.slane %v2241_v1, 7  ;;  %v53_v21 = vrot.slane %v2236_v0, 7  ;;  %vm81_vm1 = vcmask 261120   ;;  %vm84_vm2 = vcmask 523264  }
  0x1b   :  { %vm143_vm3 = vcmask 785408   ;;  %v2034_v31 = vld [vmem:[%s2645_s3] sm:$0xff]   ;;  %v2035_v33 = vld [vmem:[%s2645_s3 + $0x8] sm:$0xff]   ;;  %v2036_v34 = vld [vmem:[%s2645_s3 + $0x10] sm:$0xff]   ;;  %vm390_vm4 = vcmask 64512   ;;  %vm510_vm5 = vcmask 1043456  }
  0x1c   :  { %v2037_v35 = vld [vmem:[%s2645_s3 + $0x18] sm:$0xff]   ;;  %v2038_v36 = vld [vmem:[%s2645_s3 + $0x20] sm:$0xff]   ;;  %v2039_v37 = vld [vmem:[%s2645_s3 + $0x28] sm:$0xff]   ;;  %s2151_s5 = smov 8   ;;  %s2152_s29 = smov 16   ;;  %vm1292_vm6 = vcmask 130048  }
  0x1d   :  { %v1692_v46 = vld [vmem:[%s2646_s4] ss:$0 sm:$0xff]  ;;  %s2149_s4 = smov 112   ;;  %s2153_s18 = smov 24   ;;  %vm1295_vm7 = vcmask 195584  }
  0x1e   :  { %v1684_v47 = vld [vmem:[%s2644_s2] ss:$0 sm:$0xff]  ;;  %s2148_s2 = smov 120  }
  0x1f   :  { %v1700_v56 = vld [vmem:[%s2648_s6] ss:$0 sm:$0xff]  ;;  %s2150_s6 = smov 104  }
  0x76   :  { %v1984_v19 = vpop.permute.xlu0 %1983 }
  0x77   :  { %v1986_v22 = vunpack.i.h.bf16 %v1984_v19  ;;  %v1985_v23 = vunpack.i.l.bf16 %v1984_v19 }
  0x79   :  { %v83_v27 = vsel %vm81_vm1, %v54_v20, %v1986_v22  ;;  %v82_v28 = vsel %vm81_vm1, %v53_v21, %v1985_v23 }
  0x7a   :  { %v1989_v24 = vpop.permute.xlu0 %1988 }
  0x7b   :  { %v1991_v25 = vunpack.i.h.bf16 %v1989_v24  ;;  %v1990_v26 = vunpack.i.l.bf16 %v1989_v24 }
  0x7d   :  { %v86_v29 = vsel %vm84_vm2, %v83_v27, %v1991_v25  ;;  %v85_v30 = vsel %vm84_vm2, %v82_v28, %v1990_v26 }
  0x7e   :  { %v87_v32 = vpack.c.bf16 %v86_v29, %v85_v30 }
  0x80   :  { %1821 = vmatmul.mubr.msk.bf16.vlgmr.msra.gmra.mrb[0].mxu1 %vm143_vm3, %v87_v32  ;;  %1853 = vmatmul.mubr.msk.bf16.vlgmr.msra.gmra.mrb[0].mxu0 %vm143_vm3, %v87_v32 }
  0x81   :  { %1825 = vmatpush3.bf16.msra.mxu1 %v2034_v31  ;;  %1836 = vmatprep.mubr.msk.bf16.mxu1 %vm2147_vm0, %v2144_v5 }
  0x82   :  { %1826 = vmatprep.subr.bf16.mxu1 %v2144_v5  ;;  %1858 = vmatprep.mubr.msk.bf16.mxu0 %vm2147_vm0, %v2144_v5 }
  0x85   :  { %1827 = vmatpush3.bf16.msra.mxu1 %v2035_v33 }
  0x86   :  { %1828 = vmatprep.subr.bf16.mxu1 %v2144_v5 }
  0x89   :  { %1829 = vmatpush3.bf16.msra.mxu1 %v2036_v34 }
  0x8a   :  { %1830 = vmatprep.subr.bf16.mxu1 %v2144_v5 }
  0x8d   :  { %1831 = vmatpush3.bf16.msra.mxu1 %v2037_v35 }
  0x8e   :  { %1832 = vmatprep.subr.bf16.mxu1 %v2144_v5 }
  0x91   :  { %1833 = vmatpush3.bf16.msra.mxu1 %v2038_v36 }
  0x92   :  { %1834 = vmatprep.subr.bf16.mxu1 %v2144_v5 }
  0x95   :  { %1835 = vmatpush3.bf16.msra.mxu1 %v2039_v37 }
  0x96   :  { %1862 = vmatprep.subr.bf16.mxu1 %v2144_v5 }
  0x98   :  { %1837 = vmatmul.mubr.msk.bf16.vlgmr.msra.gmra.mrb[4].mxu1 %vm143_vm3, %v87_v32 }
  0x99   :  { %1864 = vmatprep.mubr.msk.bf16.mxu1 %vm2147_vm0, %v2144_v5 }
 0x153   :  { %v181_v38 = vpop.f32.mrb[0].mxu1  ;;  %v373_v39 = vpop.f32.mrb[0].mxu0 }
 0x154   :  { %v1822_v40 = vpop.f32.mrb[1].mxu1  ;;  %v1854_v41 = vpop.f32.mrb[1].mxu0  ;;  %v182_v52 = vadd.f32 %v1684_v47, %v181_v38  ;;  %v374_v62 = vadd.f32 %v1700_v56, %v373_v39 }
 0x155   :  { %v184_v42 = vpop.f32.mrb[2].mxu1  ;;  %v376_v43 = vpop.f32.mrb[2].mxu0 }
 0x156   :  { %v1823_v44 = vpop.f32.mrb[3].mxu1  ;;  %v1855_v45 = vpop.f32.mrb[3].mxu0  ;;  %v185_v57 = vadd.f32 %v1684_v47, %v184_v42  ;;  %v377_v58 = vadd.f32 %v1700_v56, %v376_v43  ;;  %v382_v61 = vmul.f32 0.5, %v182_v52  ;;  %v2367_v3 = vpack.c.bf16 %v374_v62, %v374_v62 }
 0x158   :  { %v383_v0 = vmul.f32 0.5, %v185_v57  ;;  %v2362_v1 = vpack.c.bf16 %v377_v58, %v377_v58  ;;  %v2365_v2 = vpack.c.bf16 %v382_v61, %v382_v61  ;;  %v512_v7 = vsel %vm510_vm5, %v2367_v3, 0 }
 0x15a   :  { %v2369_v4 = vpack.c.bf16 %v383_v0, %v383_v0  ;;  %v558_v6 = vsel %vm510_vm5, %v2362_v1, 0 }
 0x16b   :  { %v277_v48 = vpop.f32.mrb[4].mxu1 }
 0x16c   :  { %v278_v49 = vadd.f32 %v1692_v46, %v277_v48  ;;  %v1838_v50 = vpop.f32.mrb[5].mxu1 }
 0x16d   :  { %v280_v51 = vpop.f32.mrb[6].mxu1 }
 0x16e   :  { %380 = vst.msk [vmem:[#allocation4] sm:$0xff] %vm81_vm1, %v278_v49  ;;  %v2349_v53 = vpack.c.bf16 %v278_v49, %v278_v49  ;;  %v281_v54 = vadd.f32 %v1692_v46, %v280_v51  ;;  %v1839_v55 = vpop.f32.mrb[7].mxu1 }
 0x170   :  { %381 = vst.msk [vmem:[#allocation4 + $0x8] sm:$0xff] %vm81_vm1, %v281_v54  ;;  %v2355_v59 = vpack.c.bf16 %v281_v54, %v281_v54  ;;  %v395_v60 = vsel %vm390_vm4, %v2349_v53, 0 }
 0x171   :  { %1857 = vmatpush3.bf16.xpose.msra.mxu0 %v395_v60 }
 0x172   :  { %v441_v63 = vsel %vm390_vm4, %v2355_v59, 0  ;;  %1874 = vmatprep.subr.bf16.mxu0 %v2144_v5 }
 0x173   :  { %1863 = vmatpush3.bf16.xpose.msra.mxu1 %v441_v63 }
 0x174   :  { %1868 = vmatprep.subr.bf16.mxu1 %v2144_v5 }
 0x178   :  { %1859 = vmatmul.mubr.msk.bf16.vlgmr.msra.gmra.mrb[4].mxu0 %vm390_vm4, %v2365_v2 }
 0x179   :  { %1875 = vmatpush3.bf16.msra.mxu0 %v558_v6  ;;  %1876 = vmatprep.mubr.msk.bf16.mxu0 %vm2147_vm0, %v2144_v5 }
 0x17a   :  { %1865 = vmatmul.mubr.msk.bf16.vlgmr.msra.gmra.mrb[8].mxu1 %vm390_vm4, %v2369_v4  ;;  %1886 = vmatprep.subr.bf16.mxu0 %v2144_v5 }
 0x17b   :  { %1869 = vmatpush3.bf16.msra.mxu1 %v512_v7  ;;  %1870 = vmatprep.mubr.msk.bf16.mxu1 %vm2147_vm0, %v2144_v5 }
 0x17c   :  { %1880 = vmatprep.subr.bf16.mxu1 %v2144_v5 }
 0x24b   :  { %v431_v8 = vpop.f32.mrb[4].mxu0 }
 0x24c   :  { %v1860_v9 = vpop.f32.mrb[5].mxu0  ;;  %v483_v10 = vsel %vm390_vm4, %v431_v8, -inf }
 0x24d   :  { %484 = vmax.xlane.f32.xlu1 %v483_v10  ;;  %v434_v11 = vpop.f32.mrb[6].mxu0  ;;  %v477_v12 = vpop.f32.mrb[8].mxu1 }
 0x24e   :  { %v1861_v13 = vpop.f32.mrb[7].mxu0  ;;  %v1866_v14 = vpop.f32.mrb[9].mxu1  ;;  %v486_v17 = vsel %vm390_vm4, %v477_v12, -inf }
 0x24f   :  { %v480_v15 = vpop.f32.mrb[10].mxu1 }
 0x250   :  { %v1867_v16 = vpop.f32.mrb[11].mxu1 }
 0x251   :  { %487 = vmax.xlane.f32.xlu1 %v486_v17 }
 0x262   :  { %604 = vrot.lane.b32.xlu1 %v2349_v53, %s2148_s2 }
 0x266   :  { %656 = vrot.lane.b32.xlu1 %v2355_v59, %s2148_s2 }
 0x2da   :  { %v485_v18 = vpop.xlane.xlu1 %484 }
 0x2db   :  { %v489_v19 = vsub.f32 %v431_v8, %v485_v18 }
 0x2dd   :  { %v491_v20 = vmul.f32 1.442695, %v489_v19 }
 0x2de   :  { %v488_v21 = vpop.xlane.xlu1 %487 }
 0x2df   :  { %2058 = vpow2.f32 %v491_v20  ;;  %v490_v22 = vsub.f32 %v477_v12, %v488_v21 }
 0x2e1   :  { %v493_v23 = vmul.f32 1.442695, %v490_v22 }
 0x2e2   :  { %v605_v28 = vpop.permute.xlu1 %604 }
 0x2e3   :  { %2060 = vpow2.f32 %v493_v23  ;;  %v610_v36 = vsel %vm390_vm4, %v605_v28, 0 }
 0x2e6   :  { %v657_v29 = vpop.permute.xlu1 %656 }
 0x2e7   :  { %v662_v39 = vsel %vm390_vm4, %v657_v29, 0 }
 0x2e9   :  { %v2059_v24 = vpop.eup %2058 }
 0x2ea   :  { %v495_v25 = vsel %vm390_vm4, %v2059_v24, 0.0 }
 0x2eb   :  { %496 = vadd.xlane.f32.xlu0 %v495_v25 }
 0x2ed   :  { %v2061_v26 = vpop.eup %2060 }
 0x2ee   :  { %v498_v27 = vsel %vm390_vm4, %v2061_v26, 0.0 }
 0x2ef   :  { %499 = vadd.xlane.f32.xlu1 %v498_v27 }
 0x300   :  { %601 = vrot.lane.b32.xlu1 %v2365_v2, %s2148_s2 }
 0x304   :  { %653 = vrot.lane.b32.xlu1 %v2369_v4, %s2148_s2 }
 0x378   :  { %v497_v30 = vpop.xlane.xlu0 %496 }
 0x379   :  { %2062 = vrcp.f32 %v497_v30 }
 0x37c   :  { %v500_v31 = vpop.xlane.xlu1 %499 }
 0x37d   :  { %2064 = vrcp.f32 %v500_v31 }
 0x380   :  { %v602_v40 = vpop.permute.xlu1 %601 }
 0x383   :  { %v2063_v32 = vpop.eup %2062 }
 0x384   :  { %v503_v33 = vmul.f32 %v2063_v32, %v2059_v24  ;;  %v654_v41 = vpop.permute.xlu1 %653 }
 0x386   :  { %v505_v34 = vpack.c.bf16 %v503_v33, %v503_v33 }
 0x387   :  { %v2065_v35 = vpop.eup %2064 }
 0x388   :  { %v504_v37 = vmul.f32 %v2065_v35, %v2061_v26  ;;  %1871 = vmatmul.mubr.msk.bf16.vlgmr.msra.gmra.mrb[12].mxu1 %vm390_vm4, %v505_v34 }
 0x389   :  { %1881 = vmatpush3.bf16.xpose.msra.mxu1 %v610_v36  ;;  %1882 = vmatprep.mubr.msk.bf16.mxu1 %vm2147_vm0, %v2144_v5 }
 0x38a   :  { %v506_v38 = vpack.c.bf16 %v504_v37, %v504_v37  ;;  %1892 = vmatprep.subr.bf16.mxu1 %v2144_v5 }
 0x38c   :  { %1877 = vmatmul.mubr.msk.bf16.vlgmr.msra.gmra.mrb[8].mxu0 %vm390_vm4, %v506_v38 }
 0x38d   :  { %1887 = vmatpush3.bf16.xpose.msra.mxu0 %v662_v39  ;;  %1888 = vmatprep.mubr.msk.bf16.mxu0 %vm2147_vm0, %v2144_v5 }
 0x38e   :  { %1898 = vmatprep.subr.bf16.mxu0 %v2144_v5 }
 0x390   :  { %1883 = vmatmul.mubr.msk.bf16.vlgmr.msra.gmra.mrb[16].mxu1 %vm390_vm4, %v602_v40 }
 0x391   :  { %1894 = vmatprep.mubr.msk.bf16.mxu1 %vm2147_vm0, %v2144_v5 }
 0x394   :  { %1889 = vmatmul.mubr.msk.bf16.vlgmr.msra.gmra.mrb[12].mxu0 %vm390_vm4, %v654_v41 }
 0x395   :  { %1900 = vmatprep.mubr.msk.bf16.mxu0 %vm2147_vm0, %v2144_v5 }
 0x45b   :  { %v2413_v42 = vpop.f32.mrb[12].mxu1 }
 0x45c   :  { %v1872_v43 = vpop.f32.mrb[13].mxu1 }
 0x45d   :  { %v551_v44 = vpop.f32.mrb[14].mxu1 }
 0x45e   :  { %v1873_v45 = vpop.f32.mrb[15].mxu1 }
 0x45f   :  { %v2415_v46 = vpop.f32.mrb[8].mxu0 }
 0x460   :  { %v1878_v47 = vpop.f32.mrb[9].mxu0 }
 0x461   :  { %v597_v48 = vpop.f32.mrb[10].mxu0 }
 0x462   :  { %v1879_v49 = vpop.f32.mrb[11].mxu0 }
 0x463   :  { %v646_v50 = vpop.f32.mrb[16].mxu1 }
 0x464   :  { %v1884_v51 = vpop.f32.mrb[17].mxu1  ;;  %v704_v52 = vsel %vm390_vm4, %v646_v50, -inf }
 0x465   :  { %705 = vmax.xlane.f32.xlu0 %v704_v52  ;;  %v649_v54 = vpop.f32.mrb[18].mxu1 }
 0x466   :  { %v1885_v55 = vpop.f32.mrb[19].mxu1 }
 0x467   :  { %v698_v56 = vpop.f32.mrb[12].mxu0 }
 0x468   :  { %v1890_v57 = vpop.f32.mrb[13].mxu0  ;;  %v707_v58 = vsel %vm390_vm4, %v698_v56, -inf }
 0x469   :  { %708 = vmax.xlane.f32.xlu1 %v707_v58  ;;  %v701_v60 = vpop.f32.mrb[14].mxu0 }
 0x46a   :  { %v1891_v61 = vpop.f32.mrb[15].mxu0 }
 0x47a   :  { %878 = vrot.lane.b32.xlu1 %v2355_v59, %s2149_s4 }
 0x47b   :  { %729 = vrot.lane.b32.xlu0 %v2367_v3, %s2148_s2 }
 0x47f   :  { %778 = vrot.lane.b32.xlu0 %v2362_v1, %s2148_s2 }
 0x4f2   :  { %v706_v62 = vpop.xlane.xlu0 %705 }
 0x4f3   :  { %v710_v63 = vsub.f32 %v646_v50, %v706_v62 }
 0x4f5   :  { %v712_v0 = vmul.f32 1.442695, %v710_v63 }
 0x4f6   :  { %v709_v6 = vpop.xlane.xlu1 %708  ;;  %v730_v7 = vpop.permute.xlu0 %729 }
 0x4f7   :  { %2066 = vpow2.f32 %v712_v0  ;;  %v711_v8 = vsub.f32 %v698_v56, %v709_v6  ;;  %v735_v9 = vsel %vm510_vm5, %v730_v7, 0 }
 0x4f8   :  { %1893 = vmatpush3.bf16.msra.mxu1 %v735_v9 }
 0x4f9   :  { %v714_v10 = vmul.f32 1.442695, %v711_v8  ;;  %1904 = vmatprep.subr.bf16.mxu1 %v2144_v5 }
 0x4fa   :  { %v779_v11 = vpop.permute.xlu0 %778  ;;  %v879_v26 = vpop.permute.xlu1 %878 }
 0x4fb   :  { %2068 = vpow2.f32 %v714_v10  ;;  %v784_v12 = vsel %vm510_vm5, %v779_v11, 0  ;;  %v884_v28 = vsel %vm390_vm4, %v879_v26, 0 }
 0x4fc   :  { %1899 = vmatpush3.bf16.msra.mxu0 %v784_v12 }
 0x4fd   :  { %1910 = vmatprep.subr.bf16.mxu0 %v2144_v5 }
 0x501   :  { %v2067_v13 = vpop.eup %2066 }
 0x502   :  { %v716_v14 = vsel %vm390_vm4, %v2067_v13, 0.0 }
 0x503   :  { %717 = vadd.xlane.f32.xlu0 %v716_v14 }
 0x505   :  { %v2069_v15 = vpop.eup %2068 }
 0x506   :  { %v719_v16 = vsel %vm390_vm4, %v2069_v15, 0.0 }
 0x507   :  { %720 = vadd.xlane.f32.xlu0 %v719_v16 }
 0x51d   :  { %828 = vrot.lane.b32.xlu0 %v2349_v53, %s2149_s4 }
 0x521   :  { %826 = vrot.lane.b32.xlu0 %v2365_v2, %s2149_s4 }
 0x525   :  { %876 = vrot.lane.b32.xlu0 %v2369_v4, %s2149_s4 }
 0x590   :  { %v718_v17 = vpop.xlane.xlu0 %717 }
 0x591   :  { %2070 = vrcp.f32 %v718_v17 }
 0x594   :  { %v721_v18 = vpop.xlane.xlu0 %720 }
 0x595   :  { %2072 = vrcp.f32 %v721_v18 }
 0x598   :  { %v829_v21 = vpop.permute.xlu0 %828 }
 0x599   :  { %v834_v25 = vsel %vm390_vm4, %v829_v21, 0 }
 0x59b   :  { %v2071_v19 = vpop.eup %2070 }
 0x59c   :  { %v724_v20 = vmul.f32 %v2071_v19, %v2067_v13  ;;  %v827_v29 = vpop.permute.xlu0 %826 }
 0x59e   :  { %v726_v22 = vpack.c.bf16 %v724_v20, %v724_v20 }
 0x59f   :  { %v2073_v23 = vpop.eup %2072 }
 0x5a0   :  { %v725_v24 = vmul.f32 %v2073_v23, %v2069_v15  ;;  %1895 = vmatmul.mubr.msk.bf16.vlgmr.msra.gmra.mrb[20].mxu1 %vm390_vm4, %v726_v22  ;;  %v877_v30 = vpop.permute.xlu0 %876 }
 0x5a1   :  { %1905 = vmatpush3.bf16.xpose.msra.mxu1 %v834_v25  ;;  %1906 = vmatprep.mubr.msk.bf16.mxu1 %vm2147_vm0, %v2144_v5 }
 0x5a2   :  { %v727_v27 = vpack.c.bf16 %v725_v24, %v725_v24  ;;  %1916 = vmatprep.subr.bf16.mxu1 %v2144_v5 }
 0x5a4   :  { %1901 = vmatmul.mubr.msk.bf16.vlgmr.msra.gmra.mrb[16].mxu0 %vm390_vm4, %v727_v27 }
 0x5a5   :  { %1911 = vmatpush3.bf16.xpose.msra.mxu0 %v884_v28  ;;  %1912 = vmatprep.mubr.msk.bf16.mxu0 %vm2147_vm0, %v2144_v5 }
 0x5a6   :  { %1922 = vmatprep.subr.bf16.mxu0 %v2144_v5 }
 0x5a8   :  { %1907 = vmatmul.mubr.msk.bf16.vlgmr.msra.gmra.mrb[24].mxu1 %vm390_vm4, %v827_v29 }
 0x5a9   :  { %1918 = vmatprep.mubr.msk.bf16.mxu1 %vm2147_vm0, %v2144_v5 }
 0x5ac   :  { %1913 = vmatmul.mubr.msk.bf16.vlgmr.msra.gmra.mrb[20].mxu0 %vm390_vm4, %v877_v30 }
 0x5ad   :  { %1924 = vmatprep.mubr.msk.bf16.mxu0 %vm2147_vm0, %v2144_v5 }
 0x673   :  { %v2453_v31 = vpop.f32.mrb[20].mxu1 }
 0x674   :  { %v1896_v32 = vpop.f32.mrb[21].mxu1 }
 0x675   :  { %v774_v33 = vpop.f32.mrb[22].mxu1 }
 0x676   :  { %v1897_v34 = vpop.f32.mrb[23].mxu1 }
 0x677   :  { %v2455_v35 = vpop.f32.mrb[16].mxu0 }
 0x678   :  { %v1992_v36 = vpack.i.bf16 %v2455_v35, %v2453_v31  ;;  %v1902_v37 = vpop.f32.mrb[17].mxu0 }
 0x679   :  { %v823_v38 = vpop.f32.mrb[18].mxu0 }
 0x67a   :  { %v1903_v39 = vpop.f32.mrb[19].mxu0 }
 0x67b   :  { %v870_v40 = vpop.f32.mrb[24].mxu1 }
 0x67c   :  { %v1908_v41 = vpop.f32.mrb[25].mxu1  ;;  %v926_v43 = vsel %vm390_vm4, %v870_v40, -inf }
 0x67d   :  { %927 = vmax.xlane.f32.xlu0 %v926_v43  ;;  %v873_v44 = vpop.f32.mrb[26].mxu1 }
 0x67e   :  { %v1909_v45 = vpop.f32.mrb[27].mxu1 }
 0x67f   :  { %v920_v47 = vpop.f32.mrb[20].mxu0 }
 0x680   :  { %v1914_v48 = vpop.f32.mrb[21].mxu0  ;;  %v929_v49 = vsel %vm390_vm4, %v920_v47, -inf }
 0x681   :  { %930 = vmax.xlane.f32.xlu1 %v929_v49  ;;  %v923_v50 = vpop.f32.mrb[22].mxu0 }
 0x682   :  { %v1915_v51 = vpop.f32.mrb[23].mxu0 }
 0x692   :  { %998 = vrot.lane.b32.xlu1 %v2362_v1, %s2149_s4 }
 0x693   :  { %950 = vrot.lane.b32.xlu0 %v2367_v3, %s2149_s4 }
 0x696   :  { %1048 = vrot.lane.b32.xlu1 %v2349_v53, %s2150_s6 }
 0x69a   :  { %1046 = vrot.lane.b32.xlu1 %v2365_v2, %s2150_s6 }
 0x70a   :  { %v928_v52 = vpop.xlane.xlu0 %927 }
 0x70b   :  { %v932_v54 = vsub.f32 %v870_v40, %v928_v52 }
 0x70d   :  { %v934_v55 = vmul.f32 1.442695, %v932_v54 }
 0x70e   :  { %v931_v56 = vpop.xlane.xlu1 %930  ;;  %v951_v57 = vpop.permute.xlu0 %950 }
 0x70f   :  { %2074 = vpow2.f32 %v934_v55  ;;  %v933_v58 = vsub.f32 %v920_v47, %v931_v56  ;;  %v956_v60 = vsel %vm510_vm5, %v951_v57, 0 }
 0x710   :  { %1917 = vmatpush3.bf16.msra.mxu1 %v956_v60 }
 0x711   :  { %v936_v61 = vmul.f32 1.442695, %v933_v58  ;;  %1928 = vmatprep.subr.bf16.mxu1 %v2144_v5 }
 0x712   :  { %v999_v62 = vpop.permute.xlu1 %998 }
 0x713   :  { %2076 = vpow2.f32 %v936_v61  ;;  %v1004_v53 = vsel %vm510_vm5, %v999_v62, 0 }
 0x714   :  { %1923 = vmatpush3.bf16.msra.mxu0 %v1004_v53 }
 0x715   :  { %1934 = vmatprep.subr.bf16.mxu0 %v2144_v5 }
 0x716   :  { %v1049_v11 = vpop.permute.xlu1 %1048 }
 0x717   :  { %v1054_v14 = vsel %vm390_vm4, %v1049_v11, 0 }
 0x719   :  { %v2075_v2 = vpop.eup %2074 }
 0x71a   :  { %v938_v63 = vsel %vm390_vm4, %v2075_v2, 0.0  ;;  %v1047_v17 = vpop.permute.xlu1 %1046 }
 0x71b   :  { %939 = vadd.xlane.f32.xlu0 %v938_v63  ;;  %v2040_v63 = vld [vmem:[%s2649_s7] sm:$0xff]  }
 0x71d   :  { %v2077_v0 = vpop.eup %2076 }
 0x71e   :  { %v941_v6 = vsel %vm390_vm4, %v2077_v0, 0.0 }
 0x71f   :  { %942 = vadd.xlane.f32.xlu0 %v941_v6 }
 0x735   :  { %1098 = vrot.lane.b32.xlu0 %v2355_v59, %s2150_s6 }
 0x739   :  { %1096 = vrot.lane.b32.xlu0 %v2369_v4, %s2150_s6 }
 0x7a8   :  { %v940_v7 = vpop.xlane.xlu0 %939 }
 0x7a9   :  { %2078 = vrcp.f32 %v940_v7  ;;  %v2041_v7 = vld [vmem:[%s2649_s7 + $0x8] sm:$0xff]  }
 0x7ac   :  { %v943_v8 = vpop.xlane.xlu0 %942 }
 0x7ad   :  { %2080 = vrcp.f32 %v943_v8 }
 0x7b0   :  { %v1099_v16 = vpop.permute.xlu0 %1098 }
 0x7b1   :  { %v1104_v4 = vsel %vm390_vm4, %v1099_v16, 0 }
 0x7b3   :  { %v2079_v9 = vpop.eup %2078 }
 0x7b4   :  { %v946_v10 = vmul.f32 %v2079_v9, %v2075_v2  ;;  %v1097_v18 = vpop.permute.xlu0 %1096 }
 0x7b6   :  { %v948_v12 = vpack.c.bf16 %v946_v10, %v946_v10 }
 0x7b7   :  { %v2081_v13 = vpop.eup %2080 }
 0x7b8   :  { %v947_v15 = vmul.f32 %v2081_v13, %v2077_v0  ;;  %1919 = vmatmul.mubr.msk.bf16.vlgmr.msra.gmra.mrb[28].mxu1 %vm390_vm4, %v948_v12  ;;  %v2042_v12 = vld [vmem:[%s2649_s7 + $0x10] sm:$0xff]   ;;  %v2043_v13 = vld [vmem:[%s2649_s7 + $0x18] sm:$0xff]  }
 0x7b9   :  { %1929 = vmatpush3.bf16.xpose.msra.mxu1 %v1054_v14  ;;  %1930 = vmatprep.mubr.msk.bf16.mxu1 %vm2147_vm0, %v2144_v5 }
 0x7ba   :  { %v949_v59 = vpack.c.bf16 %v947_v15, %v947_v15  ;;  %1940 = vmatprep.subr.bf16.mxu1 %v2144_v5  ;;  %v2044_v15 = vld [vmem:[%s2649_s7 + $0x20] sm:$0xff]  }
 0x7bc   :  { %1925 = vmatmul.mubr.msk.bf16.vlgmr.msra.gmra.mrb[24].mxu0 %vm390_vm4, %v949_v59 }
 0x7bd   :  { %1935 = vmatpush3.bf16.xpose.msra.mxu0 %v1104_v4  ;;  %1936 = vmatprep.mubr.msk.bf16.mxu0 %vm2147_vm0, %v2144_v5  ;;  %v2045_v4 = vld [vmem:[%s2649_s7 + $0x28] sm:$0xff]  }
 0x7be   :  { %1946 = vmatprep.subr.bf16.mxu0 %v2144_v5 }
 0x7c0   :  { %1931 = vmatmul.mubr.msk.bf16.vlgmr.msra.gmra.mrb[32].mxu1 %vm390_vm4, %v1047_v17 }
 0x7c1   :  { %1942 = vmatprep.mubr.msk.bf16.mxu1 %vm2147_vm0, %v2144_v5 }
 0x7c4   :  { %1937 = vmatmul.mubr.msk.bf16.vlgmr.msra.gmra.mrb[28].mxu0 %vm390_vm4, %v1097_v18 }
 0x7c5   :  { %1948 = vmatprep.mubr.msk.bf16.mxu0 %vm2147_vm0, %v2144_v5 }
 0x88b   :  { %v992_v19 = vpop.f32.mrb[28].mxu1 }
 0x88c   :  { %v1920_v20 = vpop.f32.mrb[29].mxu1 }
 0x88d   :  { %v995_v21 = vpop.f32.mrb[30].mxu1 }
 0x88e   :  { %v1921_v22 = vpop.f32.mrb[31].mxu1 }
 0x88f   :  { %v1040_v23 = vpop.f32.mrb[24].mxu0 }
 0x890   :  { %v1997_v24 = vpack.i.bf16 %v1040_v23, %v992_v19  ;;  %v1926_v25 = vpop.f32.mrb[25].mxu0 }
 0x891   :  { %v1043_v26 = vpop.f32.mrb[26].mxu0 }
 0x892   :  { %v1927_v27 = vpop.f32.mrb[27].mxu0 }
 0x893   :  { %v1090_v28 = vpop.f32.mrb[32].mxu1 }
 0x894   :  { %v1932_v29 = vpop.f32.mrb[33].mxu1  ;;  %v1146_v30 = vsel %vm390_vm4, %v1090_v28, -inf }
 0x895   :  { %1147 = vmax.xlane.f32.xlu1 %v1146_v30  ;;  %v1093_v32 = vpop.f32.mrb[34].mxu1 }
 0x896   :  { %v1933_v33 = vpop.f32.mrb[35].mxu1 }
 0x897   :  { %v1140_v34 = vpop.f32.mrb[28].mxu0 }
 0x898   :  { %v1938_v37 = vpop.f32.mrb[29].mxu0  ;;  %v1149_v38 = vsel %vm390_vm4, %v1140_v34, -inf }
 0x899   :  { %1150 = vmax.xlane.f32.xlu0 %v1149_v38  ;;  %v1143_v39 = vpop.f32.mrb[30].mxu0 }
 0x89a   :  { %v1939_v40 = vpop.f32.mrb[31].mxu0 }
 0x922   :  { %v1148_v41 = vpop.xlane.xlu1 %1147 }
 0x923   :  { %v1152_v43 = vsub.f32 %v1090_v28, %v1148_v41 }
 0x925   :  { %v1154_v44 = vmul.f32 1.442695, %v1152_v43 }
 0x926   :  { %v1151_v45 = vpop.xlane.xlu0 %1150 }
 0x927   :  { %2082 = vpow2.f32 %v1154_v44  ;;  %v1153_v47 = vsub.f32 %v1140_v34, %v1151_v45 }
 0x929   :  { %v1156_v48 = vmul.f32 1.442695, %v1153_v47 }
 0x92b   :  { %2084 = vpow2.f32 %v1156_v48  ;;  %v2046_v48 = vld [vmem:[%s2651_s9] sm:$0xff]  }
 0x931   :  { %v2083_v49 = vpop.eup %2082 }
 0x932   :  { %v1158_v50 = vsel %vm390_vm4, %v2083_v49, 0.0 }
 0x933   :  { %1159 = vadd.xlane.f32.xlu0 %v1158_v50  ;;  %v2047_v50 = vld [vmem:[%s2651_s9 + $0x8] sm:$0xff]  }
 0x935   :  { %v2085_v51 = vpop.eup %2084 }
 0x936   :  { %v1161_v52 = vsel %vm390_vm4, %v2085_v51, 0.0 }
 0x937   :  { %1162 = vadd.xlane.f32.xlu1 %v1161_v52  ;;  %v2049_v52 = vld [vmem:[%s2651_s9 + $0x18] sm:$0xff]  }
 0x948   :  { %1218 = vrot.lane.b32.xlu1 %v2362_v1, %s2150_s6 }
 0x949   :  { %1170 = vrot.lane.b32.xlu0 %v2367_v3, %s2150_s6 }
 0x94c   :  { %1993 = vrot.lane.b32.xlu1 %v1992_v36, %s2151_s5 }
 0x94d   :  { %1998 = vrot.lane.b32.xlu0 %v1997_v24, %s2152_s29 }
 0x9c0   :  { %v1160_v54 = vpop.xlane.xlu0 %1159 }
 0x9c1   :  { %2086 = vrcp.f32 %v1160_v54  ;;  %v2050_v54 = vld [vmem:[%s2651_s9 + $0x20] sm:$0xff]  }
 0x9c4   :  { %v1171_v55 = vpop.permute.xlu0 %1170  ;;  %v1163_v56 = vpop.xlane.xlu1 %1162 }
 0x9c5   :  { %v1176_v57 = vsel %vm510_vm5, %v1171_v55, 0  ;;  %2088 = vrcp.f32 %v1163_v56  ;;  %v2051_v55 = vld [vmem:[%s2651_s9 + $0x28] sm:$0xff]   ;;  %v2052_v56 = vld [vmem:[%s2651_s9 + $0x30] sm:$0xff]  }
 0x9c6   :  { %1941 = vmatpush3.bf16.msra.mxu1 %v1176_v57  ;;  %v2053_v57 = vld [vmem:[%s2651_s9 + $0x38] sm:$0xff]  }
 0x9c7   :  { %1952 = vmatprep.subr.bf16.mxu1 %v2144_v5 }
 0x9c8   :  { %v1219_v1 = vpop.permute.xlu1 %1218  ;;  %v1999_v17 = vpop.permute.xlu0 %1998 }
 0x9c9   :  { %v1224_v3 = vsel %vm510_vm5, %v1219_v1, 0  ;;  %v2001_v20 = vunpack.i.h.bf16 %v1999_v17  ;;  %v2000_v21 = vunpack.i.l.bf16 %v1999_v17  ;;  %v2054_v1 = vld [vmem:[%s2651_s9 + $0x40] sm:$0xff]  }
 0x9ca   :  { %1947 = vmatpush3.bf16.msra.mxu0 %v1224_v3  ;;  %v2055_v3 = vld [vmem:[%s2651_s9 + $0x48] sm:$0xff]  }
 0x9cb   :  { %v2087_v58 = vpop.eup %2086 }
 0x9cc   :  { %v1166_v60 = vmul.f32 %v2087_v58, %v2083_v49  ;;  %v1994_v14 = vpop.permute.xlu1 %1993  ;;  %v2154_v49 = vmov 0   ;;  %v2056_v58 = vld [vmem:[%s2651_s9 + $0x50] sm:$0xff]  }
 0x9cd   :  { %v1996_v16 = vunpack.i.h.bf16 %v1994_v14  ;;  %v1995_v59 = vunpack.i.l.bf16 %v1994_v14  ;;  %1562 = vmatprep.subr.bf16.mxu0 %v2154_v49 }
 0x9ce   :  { %v1168_v31 = vpack.c.bf16 %v1166_v60, %v1166_v60  ;;  %v2057_v60 = vld [vmem:[%s2651_s9 + $0x58] sm:$0xff]  }
 0x9cf   :  { %v2089_v35 = vpop.eup %2088  ;;  %v1291_v18 = vsel %vm390_vm4, %v2415_v46, %v1996_v16  ;;  %v1290_v19 = vsel %vm390_vm4, %v2413_v42, %v1995_v59 }
 0x9d0   :  { %v1167_v36 = vmul.f32 %v2089_v35, %v2085_v51  ;;  %1943 = vmatmul.mubr.msk.bf16.vlgmr.msra.gmra.mrb[36].mxu1 %vm390_vm4, %v1168_v31  ;;  %v1294_v25 = vsel %vm1292_vm6, %v1291_v18, %v2001_v20  ;;  %v2048_v51 = vld [vmem:[%s2651_s9 + $0x10] sm:$0xff]   ;;  %v1724_v31 = vld [vmem:[%s2650_s8] ss:$0 sm:$0xff] }
 0x9d1   :  { %1964 = vmatprep.mubr.msk.bf16.mxu1 %vm2147_vm0, %v2144_v5  ;;  %1953 = vmatpush3.bf16.msra.mxu1 %v2040_v63 }
 0x9d2   :  { %v1169_v61 = vpack.c.bf16 %v1167_v36, %v1167_v36  ;;  %1954 = vmatprep.subr.bf16.mxu1 %v2144_v5 }
 0x9d4   :  { %1949 = vmatmul.mubr.msk.bf16.vlgmr.msra.gmra.mrb[32].mxu0 %vm390_vm4, %v1169_v61 }
 0x9d5   :  { %1955 = vmatpush3.bf16.msra.mxu1 %v2041_v7  ;;  %1563 = vmatpush1.bf16.msra.mxu0 %v2046_v48 }
 0x9d6   :  { %1956 = vmatprep.subr.bf16.mxu1 %v2144_v5  ;;  %1564 = vmatprep.subr.bf16.mxu0 %v2154_v49 }
 0x9d9   :  { %1957 = vmatpush3.bf16.msra.mxu1 %v2042_v12  ;;  %1565 = vmatpush1.bf16.msra.mxu0 %v2047_v50 }
 0x9da   :  { %1958 = vmatprep.subr.bf16.mxu1 %v2144_v5  ;;  %1566 = vmatprep.subr.bf16.mxu0 %v2154_v49 }
 0x9dd   :  { %1959 = vmatpush3.bf16.msra.mxu1 %v2043_v13  ;;  %1567 = vmatpush1.bf16.msra.mxu0 %v2048_v51 }
 0x9de   :  { %1960 = vmatprep.subr.bf16.mxu1 %v2144_v5  ;;  %1568 = vmatprep.subr.bf16.mxu0 %v2154_v49 }
 0x9e1   :  { %1961 = vmatpush3.bf16.msra.mxu1 %v2044_v15  ;;  %1569 = vmatpush1.bf16.msra.mxu0 %v2049_v52 }
 0x9e2   :  { %1962 = vmatprep.subr.bf16.mxu1 %v2144_v5  ;;  %v1293_v5 = vsel %vm1292_vm6, %v1290_v19, %v2000_v21  ;;  %1570 = vmatprep.subr.bf16.mxu0 %v2154_v49 }
 0x9e5   :  { %1963 = vmatpush3.bf16.msra.mxu1 %v2045_v4  ;;  %1571 = vmatpush1.bf16.msra.mxu0 %v2050_v54  ;;  %v1732_v4 = vld [vmem:[%s2652_s10] ss:$0 sm:$0xff]  ;;  %s2155_s10 = smov [#allocation4]  }
 0x9e6   :  { %1572 = vmatprep.subr.bf16.mxu0 %v2154_v49 }
 0x9e9   :  { %1573 = vmatpush1.bf16.msra.mxu0 %v2051_v55 }
 0x9ea   :  { %1574 = vmatprep.subr.bf16.mxu0 %v2154_v49 }
 0x9ed   :  { %1575 = vmatpush1.bf16.msra.mxu0 %v2052_v56 }
 0x9ee   :  { %1576 = vmatprep.subr.bf16.mxu0 %v2154_v49 }
 0x9f1   :  { %1577 = vmatpush1.bf16.msra.mxu0 %v2053_v57 }
 0x9f2   :  { %1578 = vmatprep.subr.bf16.mxu0 %v2154_v49 }
 0x9f5   :  { %1579 = vmatpush1.bf16.msra.mxu0 %v2054_v1 }
 0x9f6   :  { %1580 = vmatprep.subr.bf16.mxu0 %v2154_v49 }
 0x9f9   :  { %1581 = vmatpush1.bf16.msra.mxu0 %v2055_v3 }
 0x9fa   :  { %1582 = vmatprep.subr.bf16.mxu0 %v2154_v49 }
 0x9fd   :  { %1583 = vmatpush1.bf16.msra.mxu0 %v2056_v58 }
 0x9fe   :  { %1584 = vmatprep.subr.bf16.mxu0 %v2154_v49 }
 0xa01   :  { %1585 = vmatpush1.bf16.msra.mxu0 %v2057_v60 }
 0xaa3   :  { %v1212_v62 = vpop.f32.mrb[36].mxu1 }
 0xaa4   :  { %v1944_v53 = vpop.f32.mrb[37].mxu1 }
 0xaa5   :  { %v1215_v2 = vpop.f32.mrb[38].mxu1 }
 0xaa6   :  { %v1945_v0 = vpop.f32.mrb[39].mxu1 }
 0xaa7   :  { %v1260_v6 = vpop.f32.mrb[32].mxu0 }
 0xaa8   :  { %v2002_v8 = vpack.i.bf16 %v1260_v6, %v1212_v62  ;;  %v1950_v9 = vpop.f32.mrb[33].mxu0 }
 0xaa9   :  { %v1263_v10 = vpop.f32.mrb[34].mxu0 }
 0xaaa   :  { %v1951_v11 = vpop.f32.mrb[35].mxu0  ;;  %2003 = vrot.lane.b32.xlu1 %v2002_v8, %s2153_s18 }
 0xb1c   :  { %v2004_v22 = vpop.permute.xlu1 %2003 }
 0xb1d   :  { %v2006_v23 = vunpack.i.h.bf16 %v2004_v22  ;;  %v2005_v24 = vunpack.i.l.bf16 %v2004_v22 }
 0xb1f   :  { %v1296_v26 = vsel %vm1295_vm7, %v1293_v5, %v2005_v24  ;;  %v1297_v27 = vsel %vm1295_vm7, %v1294_v25, %v2006_v23 }
 0xb20   :  { %v2007_v28 = vpack.i.bf16 %v1297_v27, %v1296_v26  ;;  %v1306_v29 = vrot.slane %v1296_v26, 1  ;;  %v1307_v30 = vrot.slane %v1297_v27, 1  ;;  %v1301_v32 = vrot.slane %v1297_v27, 7 }
 0xb21   :  { %v1300_v33 = vrot.slane %v1296_v26, 7 }
 0xb22   :  { %2008 = vrot.lane.b32.xlu0 %v2007_v28, %s2145_s23  ;;  %v2012_v46 = vpack.i.bf16 %v1307_v30, %v1306_v29 }
 0xb24   :  { %2013 = vrot.lane.b32.xlu1 %v2012_v46, %s2146_s28 }
 0xb94   :  { %v2009_v42 = vpop.permute.xlu0 %2008 }
 0xb95   :  { %v2011_v34 = vunpack.i.h.bf16 %v2009_v42  ;;  %v2010_v37 = vunpack.i.l.bf16 %v2009_v42 }
 0xb96   :  { %v2014_v40 = vpop.permute.xlu1 %2013 }
 0xb97   :  { %v1327_v38 = vsel %vm81_vm1, %v1301_v32, %v2011_v34  ;;  %v1326_v39 = vsel %vm81_vm1, %v1300_v33, %v2010_v37  ;;  %v2016_v41 = vunpack.i.h.bf16 %v2014_v40  ;;  %v2015_v43 = vunpack.i.l.bf16 %v2014_v40 }
 0xb99   :  { %v1329_v44 = vsel %vm84_vm2, %v1327_v38, %v2016_v41  ;;  %v1328_v45 = vsel %vm84_vm2, %v1326_v39, %v2015_v43 }
 0xb9a   :  { %v1330_v47 = vpack.c.bf16 %v1329_v44, %v1328_v45 }
 0xb9c   :  { %1965 = vmatmul.mubr.msk.bf16.vlgmr.msra.gmra.mrb[40].mxu1 %vm143_vm3, %v1330_v47 }
 0xc6f   :  { %v1423_v35 = vpop.f32.mrb[40].mxu1 }
 0xc70   :  { %v1424_v36 = vadd.f32 %v1724_v31, %v1423_v35  ;;  %v1966_v61 = vpop.f32.mrb[41].mxu1 }
 0xc71   :  { %v1426_v62 = vpop.f32.mrb[42].mxu1 }
 0xc72   :  { %v1430_v53 = vmax.f32 %v1424_v36, 0.0  ;;  %v1427_v2 = vadd.f32 %v1724_v31, %v1426_v62  ;;  %v1967_v63 = vpop.f32.mrb[43].mxu1 }
 0xc74   :  { %v1431_v0 = vmax.f32 %v1427_v2, 0.0  ;;  %v1440_v6 = vrot.slane %v1430_v53, 1  ;;  %v1434_v11 = vrot.slane %v1430_v53, 7 }
 0xc76   :  { %v1441_v7 = vrot.slane %v1431_v0, 1  ;;  %v2017_v8 = vpack.i.bf16 %v1431_v0, %v1430_v53  ;;  %v1435_v12 = vrot.slane %v1431_v0, 7 }
 0xc78   :  { %2018 = vrot.lane.b32.xlu0 %v2017_v8, %s2146_s28  ;;  %v1455_v9 = vpack.c.bf16 %v1441_v7, %v1440_v6  ;;  %s1669_s28 = sshll.u32 %s2155_s10, 4  ;;  %s1670_s28 = int_to_ptr.vmem [resolvable:$true] %s1669_s28 }
 0xc79   :  { %s2096_s4 = scalar_lea.vmem %s1670_s28, 256  ;;  %p2101_p1 = scmp.lt.s32.totalorder %s1670_s28, %s1670_s28 }
 0xc7a   :  { %1745 = vmatprep.mubr.msk.bf16.mxu0 %vm84_vm2, %v1455_v9  ;;  %p2097_p0 = scmp.ne.s32.totalorder %s1670_s28, %s2096_s4  ;;  %p2102_p2 = scmp.lt.s32.totalorder %s2096_s4, %s2096_s4 }
 0xc7c   :  { %p2103_p3 = por %p2102_p2, %p2101_p1 }
 0xc7e   :  { %p2104_p4 = pnand %p2103_p3, %p2097_p0 }
 0xcea   :  { %v2019_v10 = vpop.permute.xlu0 %2018 }
 0xceb   :  { %v2021_v13 = vunpack.i.h.bf16 %v2019_v10  ;;  %v2020_v14 = vunpack.i.l.bf16 %v2019_v10 }
 0xced   :  { %v1452_v15 = vsel %vm84_vm2, %v1434_v11, %v2020_v14  ;;  %v1453_v16 = vsel %vm84_vm2, %v1435_v12, %v2021_v13 }
 0xcee   :  { %v1454_v59 = vpack.c.bf16 %v1453_v16, %v1452_v15 }
 0xcf0   :  { %1595 = vmatmul.mubr.bf16.vlgmr.msra.gmra.mrb[36].mxu0 %v1454_v59 }
 0xdc3   :  { %v1596_v17 = vpop.f32.mrb[36].mxu0 }
 0xdc4   :  { %v1597_v18 = vadd.f32 %v1732_v4, %v1596_v17  ;;  %v1598_v19 = vpop.f32.mrb[37].mxu0 }
 0xdc5   :  { %v1599_v20 = vpop.f32.mrb[38].mxu0 }
 0xdc6   :  { %v1600_v21 = vadd.f32 %v1732_v4, %v1599_v20  ;;  %v1601_v22 = vpop.f32.mrb[39].mxu0  ;;  %v1603_v23 = vsel %vm81_vm1, %v1597_v18, 0.0 }
 0xdc7   :  { %1604 = vadd.xlane.f32.xlu1 %v1603_v23 }
 0xdc8   :  { %v1606_v24 = vsel %vm81_vm1, %v1600_v21, 0.0 }
 0xdc9   :  { %1607 = vadd.xlane.f32.xlu0 %v1606_v24 }
 0xe54   :  { %v1605_v5 = vpop.xlane.xlu1 %1604 }
 0xe55   :  { %v1610_v25 = vmul.f32 0.03125, %v1605_v5 }
 0xe56   :  { %v1608_v26 = vpop.xlane.xlu0 %1607 }
 0xe57   :  { %v1612_v27 = vsub.f32 %v1597_v18, %v1610_v25  ;;  %v1611_v28 = vmul.f32 0.03125, %v1608_v26 }
 0xe59   :  { %v1613_v29 = vsub.f32 %v1600_v21, %v1611_v28  ;;  %v1614_v30 = vmul.f32 %v1612_v27, %v1612_v27 }
 0xe5b   :  { %v1616_v46 = vsel %vm81_vm1, %v1614_v30, 0.0  ;;  %v1615_v42 = vmul.f32 %v1613_v29, %v1613_v29 }
 0xe5c   :  { %1617 = vadd.xlane.f32.xlu0 %v1616_v46 }
 0xe5d   :  { %v1619_v32 = vsel %vm81_vm1, %v1615_v42, 0.0 }
 0xe5e   :  { %1620 = vadd.xlane.f32.xlu1 %v1619_v32 }
 0xe5f   :  { %2107 = shalt.err (!%p2104_p4)
}
 0xe60   :  { %s2108_s30 = scalar_lea.hbm %s2656_s14, 256 }
 0xe61   :  { %p2109_p5 = scmp.ne.s32.totalorder %s2656_s14, %s2108_s30  ;;  %p2112_p6 = scmp.lt.u32.totalorder %s2108_s30, %s2656_s14 }
 0xe63   :  { %p2114_p7 = pnand %p2112_p6, %p2109_p5 }
 0xe65   :  { %2117 = shalt.err (!%p2114_p7)
}
 0xe66   :  { %s2156_s19 = smov 128   ;;  %v1746_v43 = vld [vmem:[%s2653_s11] ss:$0 sm:$0xff]  ;;  %v2095_v56 = vld [vmem:[%s2642_s0 + $0x8] sm:$0xff] }
 0xe67   :  { %1675 = dma.vmem_to_hbm [thread:$0]  %s1670_s28, 256, %s2656_s14, [#allocation5], %s2156_s19, %s2156_s19, %s2151_s5  }
 0xe68   :  { %v1747_v47 = vld [vmem:[%s2654_s12] ss:$0 sm:$0xff]  ;;  %s2157_s14 = smov [#allocation2]  }
 0xe69   :  { %s1657_s26 = sshll.u32 %s2157_s14, 4  ;;  %v2094_v54 = vld [vmem:[%s2642_s0] sm:$0xff]  ;;  %s1658_s26 = int_to_ptr.vmem [resolvable:$true] %s1657_s26 }
 0xe6a   :  { %s2118_s12 = scalar_lea.vmem %s1658_s26, 256  ;;  %p2123_p9 = scmp.lt.s32.totalorder %s1658_s26, %s1658_s26 }
 0xe6b   :  { %p2119_p8 = scmp.ne.s32.totalorder %s1658_s26, %s2118_s12  ;;  %p2124_p10 = scmp.lt.s32.totalorder %s2118_s12, %s2118_s12 }
 0xe6d   :  { %p2125_p11 = por %p2124_p10, %p2123_p9 }
 0xe6f   :  { %p2126_p12 = pnand %p2125_p11, %p2119_p8 }
 0xee9   :  { %v1618_v33 = vpop.xlane.xlu0 %1617 }
 0xeea   :  { %v1622_v34 = vmul.f32 0.03125, %v1618_v33 }
 0xeeb   :  { %v1621_v37 = vpop.xlane.xlu1 %1620 }
 0xeec   :  { %v1624_v38 = vadd.f32 1e-05, %v1622_v34  ;;  %v1623_v39 = vmul.f32 0.03125, %v1621_v37 }
 0xeee   :  { %2090 = vrsqrt.f32 %v1624_v38  ;;  %v1625_v40 = vadd.f32 1e-05, %v1623_v39 }
 0xef0   :  { %2092 = vrsqrt.f32 %v1625_v40 }
 0xef8   :  { %v2091_v41 = vpop.eup %2090 }
 0xef9   :  { %v1628_v44 = vmul.f32 %v2091_v41, %v1612_v27 }
 0xefa   :  { %v2093_v45 = vpop.eup %2092 }
 0xefb   :  { %v1629_v48 = vmul.f32 %v2093_v45, %v1613_v29  ;;  %v1637_v49 = vmul.f32 %v1746_v43, %v1628_v44 }
 0xefd   :  { %v1638_v50 = vmul.f32 %v1746_v43, %v1629_v48  ;;  %v1646_v51 = vadd.f32 %v1747_v47, %v1637_v49 }
 0xeff   :  { %v1647_v52 = vadd.f32 %v1747_v47, %v1638_v50  ;;  %v1648_v55 = vadd.f32 %v2094_v54, %v1646_v51 }
 0xf01   :  { %v1649_v57 = vadd.f32 %v2095_v56, %v1647_v52  ;;  %1650 = vst.msk [vmem:[#allocation2] sm:$0xff] %vm81_vm1, %v1648_v55 }
 0xf03   :  { %1651 = vst.msk [vmem:[#allocation2 + $0x8] sm:$0xff] %vm81_vm1, %v1649_v57 }
 0xf04   :  { %2129 = shalt.err (!%p2126_p12)
}
 0xf05   :  { %s2130_s8 = scalar_lea.hbm %s2655_s13, 256 }
 0xf06   :  { %p2131_p13 = scmp.ne.s32.totalorder %s2655_s13, %s2130_s8  ;;  %p2134_p0 = scmp.lt.u32.totalorder %s2130_s8, %s2655_s13 }
 0xf08   :  { %p2136_p1 = pnand %p2134_p0, %p2131_p13 }
 0xf0a   :  { %2139 = shalt.err (!%p2136_p1)
}
 0xf0b   :  { %1663 = dma.vmem_to_hbm [thread:$0]  %s1658_s26, 256, %s2655_s13, [#allocation3], %s2156_s19, %s2156_s19, %s2151_s5  }
 0xf0c   :  { %2140 = dma.done.wait [#allocation3], 256  }
 0xf0d   :  { %2141 = vsyncadd [#allocation3], 4294967040 }
 0xf0e   :  { %2142 = dma.done.wait [#allocation5], 256  }
 0xf0f   :  { %2143 = vsyncadd [#allocation5], 4294967040 }
 0xf10   :  { %1682 = vsyncpa [#allocation3], 1 }
 0xf11   :  { %1683 = vsyncpa [#allocation5], 1 }

</bundles_post_ra>
